<compile_context>
chip_gen: v7x
topology: tpu7x:2x2x1
jax: 0.10.0
libtpu: 0.0.40
codegen_flags: <defaults>
</compile_context>

<pallas_src>
import numpy as np
import jax
import jax.numpy as jnp
from jax.experimental import pallas as pl
from jax.experimental.pallas import tpu as pltpu


NUM_CLASSES = 5
D = 5 + NUM_CLASSES              # per-cell feature dim (box4 + obj1 + classes)
DEFAULT_MAX_LANE_TILE = 16384    # absolute lane-tile cap (VMEM budget also applies)


def _round_up(x, m):
    return ((x + m - 1) // m) * m


def _vmem_capacity_bytes():
    """Generation-aware VMEM capacity with a conservative (v7x per-TC) fallback."""
    try:
        cap = int(pltpu.get_tpu_info().vmem_capacity_bytes)
        if cap > 0:
            return cap
    except Exception:
        pass
    return 64 * 1024 * 1024


def _plan_tiles(m, d, hw, n_scales, itemsize, budget, max_lane_tile):
    """Pick (mblk, tile, nj): #(b,anchor) slices per step, lane tile, #lane steps."""
    hw128 = _round_up(hw, 128)
    d_pad = _round_up(d, 8)

    def step_bytes(mblk, lanes):
        ins = (1 + n_scales) * mblk * d_pad * lanes * itemsize * 2  # double-buffered inputs
        return ins + 2 * 8 * 128 * 4                                # out block + acc scratch

    # Common YOLO case: whole H*W row per step -> scratch-free kernel, no padding.
    if hw128 <= max_lane_tile and step_bytes(1, hw128) <= budget:
        nj, tile, lanes = 1, hw, hw128
    else:
        tile = min(max_lane_tile, hw128)
        while tile > 512 and step_bytes(1, tile) > budget:
            tile //= 2
        tile = max(128, (tile // 128) * 128)
        nj = -(-hw // tile)
        lanes = tile

    # Block several (b, anchor) slices per grid step to amortize per-step overhead,
    # but keep the leading ("parallel") grid axis >= 2 for v7x megacore.
    mblk = 1
    for cand in range(1, m + 1):
        if m % cand == 0 and m // cand >= 2 and step_bytes(cand, lanes) <= budget:
            mblk = cand
    return mblk, tile, nj


def _make_kernel(n_scales, d, mblk, tile, hw, nj):
    """Kernel over mblk (b,anchor) slices and (for nj>1) one lane tile of cells."""
    d_split = min(d, 8)                 # keep every slice inside an 8-sublane tile
    single = (nj == 1)
    ragged = (not single) and (hw % tile != 0)

    def _bce(x, z):
        # BCEWithLogits, numerically stable: max(x,0) - x*z + log1p(exp(-|x|))
        return jnp.maximum(x, 0.0) - x * z + jnp.log1p(jnp.exp(-jnp.abs(x)))

    def kernel(*refs):
        t_ref = refs[0]
        p_refs = refs[1:1 + n_scales]
        out_ref = refs[1 + n_scales]
        acc_ref = None if single else refs[2 + n_scales]

        if not single:
            j = pl.program_id(1)

        if ragged:
            lane = jax.lax.broadcasted_iota(jnp.int32, (1, tile), 1)
            valid = (lane + j * tile) < hw          # (1, tile) lane-validity mask
        else:
            valid = None

        zero = jnp.float32(0.0)
        box_sq = zero
        obj_bce = zero
        cls_bce = zero
        noobj_bce = zero
        n_obj = zero
        n_noobj = zero

        # Unrolled loop over the mblk (b, anchor) slices packed into this step.
        for i in range(mblk):
            t = t_ref[i].astype(jnp.float32)        # (d, lanes), upcast in VMEM
            if valid is not None:
                # sentinel objectness -1 on invalid lanes (neither mask) and a
                # finite value everywhere so BCE on garbage OOB reads stays finite
                t = jnp.where(valid, t, -1.0)
            t4 = t[4:5, :]
            # exact float compares mirror the PyTorch reference (targets are 0/1)
            obj = (t4 == 1.0).astype(jnp.float32)
            noobj = (t4 == 0.0).astype(jnp.float32)
            n_obj = n_obj + jnp.sum(obj)
            n_noobj = n_noobj + jnp.sum(noobj)

            t_box = t[0:4, :]
            t_a = t[4:d_split, :]                   # obj + leading classes (rows 4..7)
            t_b = t[d_split:, :] if d > d_split else None

            # Both prediction scales accumulate into local scalars; scratch (tiled
            # path only) is touched once per step, never inside the per-scale loop.
            for p_ref in p_refs:
                p = p_ref[i].astype(jnp.float32)
                if valid is not None:
                    p = jnp.where(valid, p, 0.0)

                diff = p[0:4, :] - t_box
                box_sq = box_sq + jnp.sum(diff * diff * obj)

                b_a = _bce(p[4:d_split, :], t_a)    # rows 4..7: sublane-aligned slice
                obj_row = b_a[0:1, :]
                obj_bce = obj_bce + jnp.sum(obj_row * obj)
                noobj_bce = noobj_bce + jnp.sum(obj_row * noobj)

                cls = zero
                if d_split > 5:
                    cls = cls + jnp.sum(b_a[1:, :] * obj)
                if t_b is not None:
                    b_b = _bce(p[d_split:, :], t_b)  # rows 8..d-1: aligned slice
                    cls = cls + jnp.sum(b_b * obj)
                cls_bce = cls_bce + cls

        zrow = jnp.zeros((1, 128), jnp.float32)
        if single:
            # nj == 1: scratch-free — write the reduced sums straight to the output.
            out_ref[0:1, :] = zrow + box_sq
            out_ref[1:2, :] = zrow + obj_bce
            out_ref[2:3, :] = zrow + cls_bce
            out_ref[3:4, :] = zrow + noobj_bce
            out_ref[4:5, :] = zrow + n_obj
            out_ref[5:6, :] = zrow + n_noobj
            out_ref[6:8, :] = jnp.zeros((2, 128), jnp.float32)
        else:
            @pl.when(j == 0)
            def _init():
                acc_ref[...] = jnp.zeros_like(acc_ref)

            acc_ref[0:1, :] += zrow + box_sq
            acc_ref[1:2, :] += zrow + obj_bce
            acc_ref[2:3, :] += zrow + cls_bce
            acc_ref[3:4, :] += zrow + noobj_bce
            acc_ref[4:5, :] += zrow + n_obj
            acc_ref[5:6, :] += zrow + n_noobj

            @pl.when(j == nj - 1)
            def _fin():
                out_ref[...] = acc_ref[...]

    return kernel


def _partial_sums(t_r, p_views, d, hw, max_lane_tile):
    """t_r: (M, D, HW) targets, p_views: list of (M, D, HW) prediction views.

    Returns (M // mblk, 8, 128) partial sums (rows 0..5 meaningful, lane-broadcast).
    """
    m = t_r.shape[0]
    n_scales = len(p_views)
    itemsize = max([t_r.dtype.itemsize] + [p.dtype.itemsize for p in p_views])
    cap = _vmem_capacity_bytes()
    budget = int(cap * 0.4)                         # headroom for Mosaic internals
    mblk, tile, nj = _plan_tiles(m, d, hw, n_scales, itemsize, budget, max_lane_tile)
    grid0 = m // mblk
    kernel = _make_kernel(n_scales, d, mblk, tile, hw, nj)

    if nj == 1:
        grid = (grid0,)
        in_specs = [pl.BlockSpec((mblk, d, hw), lambda i: (i, 0, 0))
                    for _ in range(1 + n_scales)]
        out_specs = pl.BlockSpec((None, 8, 128), lambda i: (i, 0, 0))
        scratch_shapes = []
        dims = ("parallel",)
    else:
        grid = (grid0, nj)
        in_specs = [pl.BlockSpec((mblk, d, tile), lambda i, j: (i, 0, j))
                    for _ in range(1 + n_scales)]
        out_specs = pl.BlockSpec((None, 8, 128), lambda i, j: (i, 0, 0))
        scratch_shapes = [pltpu.VMEM((8, 128), jnp.float32)]
        dims = ("parallel", "arbitrary")

    vmem_limit = int(min(cap // 2, 64 * 1024 * 1024))

    return pl.pallas_call(
        kernel,
        out_shape=jax.ShapeDtypeStruct((grid0, 8, 128), jnp.float32),
        grid_spec=pltpu.PrefetchScalarGridSpec(
            num_scalar_prefetch=0,
            grid=grid,
            in_specs=in_specs,
            out_specs=out_specs,
            scratch_shapes=scratch_shapes,
        ),
        compiler_params=pltpu.CompilerParams(
            dimension_semantics=dims,
            vmem_limit_bytes=vmem_limit,
        ),
    )(t_r, *p_views)


def yolo_loss(predictions, targets, num_classes=NUM_CLASSES,
              max_lane_tile=DEFAULT_MAX_LANE_TILE):
    """JAX/Pallas equivalent of YOLOLoss.forward.

    predictions: list of (B, 3*(5+num_classes), H, W) arrays (NCHW logits)
    targets:     (B, 3, H, W, 5+num_classes) array
    """
    d = 5 + num_classes
    b, a3, h, w, dd = targets.shape
    assert a3 == 3 and dd == d
    m = b * 3
    hw = h * w

    # Single D-to-major relayout of targets (shared by all scales); predictions
    # are consumed through a FREE reshape view -> no relayout, no jnp.pad, and
    # native dtype is preserved (upcast to f32 happens inside the kernel).
    t_r = targets.reshape(m, hw, d).swapaxes(1, 2)

    p_views = []
    for pred in predictions:
        pb, pc, ph, pw = pred.shape
        assert (pb, ph, pw) == (b, h, w) and pc == 3 * d, \
            "all scales must share (B, H, W) with the targets"
        p_views.append(pred.reshape(m, d, hw))

    out = _partial_sums(t_r, p_views, d, hw, max_lane_tile)   # (grid0, 8, 128)
    sums = jnp.sum(out[:, :, 0], axis=0)                       # (8,)
    box_sq, obj_bce, cls_bce = sums[0], sums[1], sums[2]
    noobj_bce, n_obj, n_noobj = sums[3], sums[4], sums[5]

    safe_obj = jnp.maximum(n_obj, 1.0)
    safe_noobj = jnp.maximum(n_noobj, 1.0)
    # nn.MSELoss / nn.BCEWithLogitsLoss 'mean' reductions.  Denominators depend
    # only on the targets (identical across scales), so the per-scale means
    # collapse onto the summed numerators.  The data-dependent
    # `if mask.sum() > 0` guards become jnp.where.
    obj_term = (box_sq / (4.0 * safe_obj)
                + obj_bce / safe_obj
                + cls_bce / (num_classes * safe_obj))
    noobj_term = 0.5 * noobj_bce / safe_noobj

    total = jnp.where(n_obj > 0, obj_term, 0.0)
    total = total + jnp.where(n_noobj > 0, noobj_term, 0.0)
    return total


def ref_loss_np(predictions, targets, num_classes=NUM_CLASSES):
    """Pure-numpy reference mirroring the PyTorch module (boolean indexing)."""
    d = 5 + num_classes
    t = np.asarray(targets, dtype=np.float64)

    def bce(x, z):
        return np.maximum(x, 0.0) - x * z + np.log1p(np.exp(-np.abs(x)))

    total = 0.0
    for pred in predictions:
        p = np.asarray(pred, dtype=np.float64)
        b, _, h, w = p.shape
        p = p.reshape(b, 3, d, h, w).transpose(0, 1, 3, 4, 2)
        obj = t[..., 4] == 1
        noobj = t[..., 4] == 0
        if obj.sum() > 0:
            po, to = p[obj], t[obj]
            box_loss = np.mean((po[:, :4] - to[:, :4]) ** 2)
            obj_loss = np.mean(bce(po[:, 4], to[:, 4]))
            cls_loss = np.mean(bce(po[:, 5:], to[:, 5:]))
            total += box_loss + obj_loss + cls_loss
        if noobj.sum() > 0:
            total += 0.5 * np.mean(bce(p[noobj][:, 4], t[noobj][:, 4]))
    return total


if __name__ == "__main__":
    key = jax.random.PRNGKey(0)

    def make_inputs(k, batch, h, w, num_classes):
        d = 5 + num_classes
        k_p0, k_p1, k_box, k_obj, k_cls = jax.random.split(k, 5)
        preds = [
            jax.random.normal(k_p0, (batch, 3 * d, h, w), dtype=jnp.float32),
            jax.random.normal(k_p1, (batch, 3 * d, h, w), dtype=jnp.float32),
        ]
        t_box = jax.random.uniform(k_box, (batch, 3, h, w, 4), dtype=jnp.float32)
        t_obj = (jax.random.uniform(k_obj, (batch, 3, h, w, 1)) < 0.3).astype(jnp.float32)
        t_cls = (jax.random.uniform(k_cls, (batch, 3, h, w, num_classes)) < 0.5
                 ).astype(jnp.float32)
        tgts = jnp.concatenate([t_box, t_obj, t_cls], axis=-1)
        return preds, tgts

    loss_fn = jax.jit(yolo_loss, static_argnames=("num_classes", "max_lane_tile"))
    k1, k2 = jax.random.split(key)

    # 1) Common path: nj == 1 (scratch-free, no padding), mblk-blocked 1-D grid.
    preds, tgts = make_inputs(k1, batch=2, h=16, w=16, num_classes=NUM_CLASSES)
    loss = jax.block_until_ready(loss_fn(preds, tgts))
    ref = ref_loss_np(preds, tgts)
    rel = abs(float(loss) - ref) / max(abs(ref), 1e-6)
    assert rel < 1e-4, f"single-tile path mismatch: {float(loss)} vs {ref} (rel {rel})"

    # 2) Tiled + ragged path: H*W = 169 with a forced 128-lane tile exercises the
    #    in-kernel lane mask and the (8,128) accumulator (no wrapper-side padding).
    preds2, tgts2 = make_inputs(k2, batch=1, h=13, w=13, num_classes=NUM_CLASSES)
    loss2 = jax.block_until_ready(loss_fn(preds2, tgts2, max_lane_tile=128))
    ref2 = ref_loss_np(preds2, tgts2)
    rel2 = abs(float(loss2) - ref2) / max(abs(ref2), 1e-6)
    assert rel2 < 1e-4, f"tiled path mismatch: {float(loss2)} vs {ref2} (rel {rel2})"

    print("KERNEL_OK")
</pallas_src>

<mosaic_0001>
module attributes {stable_mosaic.version = 11 : i64} {
  func.func @kernel(%arg0: i32, %arg1: memref<3x10x256xf32, #tpu.memory_space<vmem>>, %arg2: memref<3x10x256xf32, #tpu.memory_space<vmem>>, %arg3: memref<3x10x256xf32, #tpu.memory_space<vmem>>, %arg4: memref<1x8x128xf32, #tpu.memory_space<vmem>>) attributes {dimension_semantics = [#tpu.dimension_semantics<parallel>], iteration_bounds = array<i64: 2>, scalar_prefetch = 0 : i64, scratch_operands = 0 : i64, tpu.core_type = #tpu.core_type<tc>, window_params = [{transform_indices = @transform_0, window_bounds = array<i64: 3, 10, 256>}, {transform_indices = @transform_1, window_bounds = array<i64: 3, 10, 256>}, {transform_indices = @transform_2, window_bounds = array<i64: 3, 10, 256>}, {transform_indices = @transform_3, window_bounds = array<i64: 1, 8, 128>}]} {
    %c0 = arith.constant 0 : index
    %c0_0 = arith.constant 0 : index
    %c0_1 = arith.constant 0 : index
    %0 = vector.load %arg1[%c0, %c0_0, %c0_1] : memref<3x10x256xf32, #tpu.memory_space<vmem>>, vector<1x10x256xf32>
    %1 = vector.shape_cast %0 : vector<1x10x256xf32> to vector<10x256xf32>
    %2 = vector.extract_strided_slice %1 {offsets = [4, 0], sizes = [1, 256], strides = [1, 1]} : vector<10x256xf32> to vector<1x256xf32>
    %cst = arith.constant 1.000000e+00 : f32
    %3 = vector.broadcast %cst : f32 to vector<1x256xf32>
    %4 = arith.cmpf oeq, %2, %3 : vector<1x256xf32>
    %5 = arith.extui %4 : vector<1x256xi1> to vector<1x256xi32>
    %6 = arith.sitofp %5 : vector<1x256xi32> to vector<1x256xf32>
    %cst_2 = arith.constant 0.000000e+00 : f32
    %7 = vector.broadcast %cst_2 : f32 to vector<1x256xf32>
    %8 = arith.cmpf oeq, %2, %7 : vector<1x256xf32>
    %9 = arith.extui %8 : vector<1x256xi1> to vector<1x256xi32>
    %10 = arith.sitofp %9 : vector<1x256xi32> to vector<1x256xf32>
    %11 = vector.shape_cast %6 : vector<1x256xf32> to vector<1x1x256xf32>
    %cst_3 = arith.constant dense<0.000000e+00> : vector<1xf32>
    %12 = vector.multi_reduction <add>, %11, %cst_3 [1, 2] : vector<1x1x256xf32> to vector<1xf32>
    %13 = vector.shape_cast %12 : vector<1xf32> to vector<1x1x1xf32>
    %14 = vector.extract %13[0, 0, 0] : f32 from vector<1x1x1xf32>
    %cst_4 = arith.constant 0.000000e+00 : f32
    %15 = arith.addf %cst_4, %14 : f32
    %16 = vector.shape_cast %10 : vector<1x256xf32> to vector<1x1x256xf32>
    %cst_5 = arith.constant dense<0.000000e+00> : vector<1xf32>
    %17 = vector.multi_reduction <add>, %16, %cst_5 [1, 2] : vector<1x1x256xf32> to vector<1xf32>
    %18 = vector.shape_cast %17 : vector<1xf32> to vector<1x1x1xf32>
    %19 = vector.extract %18[0, 0, 0] : f32 from vector<1x1x1xf32>
    %cst_6 = arith.constant 0.000000e+00 : f32
    %20 = arith.addf %cst_6, %19 : f32
    %21 = vector.extract_strided_slice %1 {offsets = [0, 0], sizes = [4, 256], strides = [1, 1]} : vector<10x256xf32> to vector<4x256xf32>
    %22 = vector.extract_strided_slice %1 {offsets = [4, 0], sizes = [4, 256], strides = [1, 1]} : vector<10x256xf32> to vector<4x256xf32>
    %23 = vector.extract_strided_slice %1 {offsets = [8, 0], sizes = [2, 256], strides = [1, 1]} : vector<10x256xf32> to vector<2x256xf32>
    %c0_7 = arith.constant 0 : index
    %c0_8 = arith.constant 0 : index
    %c0_9 = arith.constant 0 : index
    %24 = vector.load %arg2[%c0_7, %c0_8, %c0_9] : memref<3x10x256xf32, #tpu.memory_space<vmem>>, vector<1x10x256xf32>
    %25 = vector.shape_cast %24 : vector<1x10x256xf32> to vector<10x256xf32>
    %26 = vector.extract_strided_slice %25 {offsets = [0, 0], sizes = [4, 256], strides = [1, 1]} : vector<10x256xf32> to vector<4x256xf32>
    %27 = arith.subf %26, %21 : vector<4x256xf32>
    %28 = arith.mulf %27, %27 : vector<4x256xf32>
    %29 = vector.broadcast %6 : vector<1x256xf32> to vector<4x256xf32>
    %30 = arith.mulf %28, %29 : vector<4x256xf32>
    %31 = vector.shape_cast %30 : vector<4x256xf32> to vector<1x4x256xf32>
    %cst_10 = arith.constant dense<0.000000e+00> : vector<1xf32>
    %32 = vector.multi_reduction <add>, %31, %cst_10 [1, 2] : vector<1x4x256xf32> to vector<1xf32>
    %33 = vector.shape_cast %32 : vector<1xf32> to vector<1x1x1xf32>
    %34 = vector.extract %33[0, 0, 0] : f32 from vector<1x1x1xf32>
    %cst_11 = arith.constant 0.000000e+00 : f32
    %35 = arith.addf %cst_11, %34 : f32
    %36 = vector.extract_strided_slice %25 {offsets = [4, 0], sizes = [4, 256], strides = [1, 1]} : vector<10x256xf32> to vector<4x256xf32>
    %cst_12 = arith.constant 0.000000e+00 : f32
    %37 = vector.broadcast %cst_12 : f32 to vector<4x256xf32>
    %38 = arith.maximumf %36, %37 : vector<4x256xf32>
    %39 = arith.mulf %36, %22 : vector<4x256xf32>
    %40 = arith.subf %38, %39 : vector<4x256xf32>
    %41 = math.absf %36 : vector<4x256xf32>
    %cst_13 = arith.constant 0.000000e+00 : f32
    %42 = vector.broadcast %cst_13 : f32 to vector<4x256xf32>
    %43 = arith.subf %42, %41 : vector<4x256xf32>
    %44 = math.exp %43 : vector<4x256xf32>
    %45 = math.log1p %44 : vector<4x256xf32>
    %46 = arith.addf %40, %45 : vector<4x256xf32>
    %47 = vector.extract_strided_slice %46 {offsets = [0, 0], sizes = [1, 256], strides = [1, 1]} : vector<4x256xf32> to vector<1x256xf32>
    %48 = arith.mulf %47, %6 : vector<1x256xf32>
    %49 = vector.shape_cast %48 : vector<1x256xf32> to vector<1x1x256xf32>
    %cst_14 = arith.constant dense<0.000000e+00> : vector<1xf32>
    %50 = vector.multi_reduction <add>, %49, %cst_14 [1, 2] : vector<1x1x256xf32> to vector<1xf32>
    %51 = vector.shape_cast %50 : vector<1xf32> to vector<1x1x1xf32>
    %52 = vector.extract %51[0, 0, 0] : f32 from vector<1x1x1xf32>
    %cst_15 = arith.constant 0.000000e+00 : f32
    %53 = arith.addf %cst_15, %52 : f32
    %54 = arith.mulf %47, %10 : vector<1x256xf32>
    %55 = vector.shape_cast %54 : vector<1x256xf32> to vector<1x1x256xf32>
    %cst_16 = arith.constant dense<0.000000e+00> : vector<1xf32>
    %56 = vector.multi_reduction <add>, %55, %cst_16 [1, 2] : vector<1x1x256xf32> to vector<1xf32>
    %57 = vector.shape_cast %56 : vector<1xf32> to vector<1x1x1xf32>
    %58 = vector.extract %57[0, 0, 0] : f32 from vector<1x1x1xf32>
    %cst_17 = arith.constant 0.000000e+00 : f32
    %59 = arith.addf %cst_17, %58 : f32
    %60 = vector.extract_strided_slice %46 {offsets = [1, 0], sizes = [3, 256], strides = [1, 1]} : vector<4x256xf32> to vector<3x256xf32>
    %61 = vector.broadcast %6 : vector<1x256xf32> to vector<3x256xf32>
    %62 = arith.mulf %60, %61 : vector<3x256xf32>
    %63 = vector.shape_cast %62 : vector<3x256xf32> to vector<1x3x256xf32>
    %cst_18 = arith.constant dense<0.000000e+00> : vector<1xf32>
    %64 = vector.multi_reduction <add>, %63, %cst_18 [1, 2] : vector<1x3x256xf32> to vector<1xf32>
    %65 = vector.shape_cast %64 : vector<1xf32> to vector<1x1x1xf32>
    %66 = vector.extract %65[0, 0, 0] : f32 from vector<1x1x1xf32>
    %cst_19 = arith.constant 0.000000e+00 : f32
    %67 = arith.addf %cst_19, %66 : f32
    %68 = vector.extract_strided_slice %25 {offsets = [8, 0], sizes = [2, 256], strides = [1, 1]} : vector<10x256xf32> to vector<2x256xf32>
    %cst_20 = arith.constant 0.000000e+00 : f32
    %69 = vector.broadcast %cst_20 : f32 to vector<2x256xf32>
    %70 = arith.maximumf %68, %69 : vector<2x256xf32>
    %71 = arith.mulf %68, %23 : vector<2x256xf32>
    %72 = arith.subf %70, %71 : vector<2x256xf32>
    %73 = math.absf %68 : vector<2x256xf32>
    %cst_21 = arith.constant 0.000000e+00 : f32
    %74 = vector.broadcast %cst_21 : f32 to vector<2x256xf32>
    %75 = arith.subf %74, %73 : vector<2x256xf32>
    %76 = math.exp %75 : vector<2x256xf32>
    %77 = math.log1p %76 : vector<2x256xf32>
    %78 = arith.addf %72, %77 : vector<2x256xf32>
    %79 = vector.broadcast %6 : vector<1x256xf32> to vector<2x256xf32>
    %80 = arith.mulf %78, %79 : vector<2x256xf32>
    %81 = vector.shape_cast %80 : vector<2x256xf32> to vector<1x2x256xf32>
    %cst_22 = arith.constant dense<0.000000e+00> : vector<1xf32>
    %82 = vector.multi_reduction <add>, %81, %cst_22 [1, 2] : vector<1x2x256xf32> to vector<1xf32>
    %83 = vector.shape_cast %82 : vector<1xf32> to vector<1x1x1xf32>
    %84 = vector.extract %83[0, 0, 0] : f32 from vector<1x1x1xf32>
    %85 = arith.addf %67, %84 : f32
    %cst_23 = arith.constant 0.000000e+00 : f32
    %86 = arith.addf %cst_23, %85 : f32
    %c0_24 = arith.constant 0 : index
    %c0_25 = arith.constant 0 : index
    %c0_26 = arith.constant 0 : index
    %87 = vector.load %arg3[%c0_24, %c0_25, %c0_26] : memref<3x10x256xf32, #tpu.memory_space<vmem>>, vector<1x10x256xf32>
    %88 = vector.shape_cast %87 : vector<1x10x256xf32> to vector<10x256xf32>
    %89 = vector.extract_strided_slice %88 {offsets = [0, 0], sizes = [4, 256], strides = [1, 1]} : vector<10x256xf32> to vector<4x256xf32>
    %90 = arith.subf %89, %21 : vector<4x256xf32>
    %91 = arith.mulf %90, %90 : vector<4x256xf32>
    %92 = vector.broadcast %6 : vector<1x256xf32> to vector<4x256xf32>
    %93 = arith.mulf %91, %92 : vector<4x256xf32>
    %94 = vector.shape_cast %93 : vector<4x256xf32> to vector<1x4x256xf32>
    %cst_27 = arith.constant dense<0.000000e+00> : vector<1xf32>
    %95 = vector.multi_reduction <add>, %94, %cst_27 [1, 2] : vector<1x4x256xf32> to vector<1xf32>
    %96 = vector.shape_cast %95 : vector<1xf32> to vector<1x1x1xf32>
    %97 = vector.extract %96[0, 0, 0] : f32 from vector<1x1x1xf32>
    %98 = arith.addf %35, %97 : f32
    %99 = vector.extract_strided_slice %88 {offsets = [4, 0], sizes = [4, 256], strides = [1, 1]} : vector<10x256xf32> to vector<4x256xf32>
    %cst_28 = arith.constant 0.000000e+00 : f32
    %100 = vector.broadcast %cst_28 : f32 to vector<4x256xf32>
    %101 = arith.maximumf %99, %100 : vector<4x256xf32>
    %102 = arith.mulf %99, %22 : vector<4x256xf32>
    %103 = arith.subf %101, %102 : vector<4x256xf32>
    %104 = math.absf %99 : vector<4x256xf32>
    %cst_29 = arith.constant 0.000000e+00 : f32
    %105 = vector.broadcast %cst_29 : f32 to vector<4x256xf32>
    %106 = arith.subf %105, %104 : vector<4x256xf32>
    %107 = math.exp %106 : vector<4x256xf32>
    %108 = math.log1p %107 : vector<4x256xf32>
    %109 = arith.addf %103, %108 : vector<4x256xf32>
    %110 = vector.extract_strided_slice %109 {offsets = [0, 0], sizes = [1, 256], strides = [1, 1]} : vector<4x256xf32> to vector<1x256xf32>
    %111 = arith.mulf %110, %6 : vector<1x256xf32>
    %112 = vector.shape_cast %111 : vector<1x256xf32> to vector<1x1x256xf32>
    %cst_30 = arith.constant dense<0.000000e+00> : vector<1xf32>
    %113 = vector.multi_reduction <add>, %112, %cst_30 [1, 2] : vector<1x1x256xf32> to vector<1xf32>
    %114 = vector.shape_cast %113 : vector<1xf32> to vector<1x1x1xf32>
    %115 = vector.extract %114[0, 0, 0] : f32 from vector<1x1x1xf32>
    %116 = arith.addf %53, %115 : f32
    %117 = arith.mulf %110, %10 : vector<1x256xf32>
    %118 = vector.shape_cast %117 : vector<1x256xf32> to vector<1x1x256xf32>
    %cst_31 = arith.constant dense<0.000000e+00> : vector<1xf32>
    %119 = vector.multi_reduction <add>, %118, %cst_31 [1, 2] : vector<1x1x256xf32> to vector<1xf32>
    %120 = vector.shape_cast %119 : vector<1xf32> to vector<1x1x1xf32>
    %121 = vector.extract %120[0, 0, 0] : f32 from vector<1x1x1xf32>
    %122 = arith.addf %59, %121 : f32
    %123 = vector.extract_strided_slice %109 {offsets = [1, 0], sizes = [3, 256], strides = [1, 1]} : vector<4x256xf32> to vector<3x256xf32>
    %124 = vector.broadcast %6 : vector<1x256xf32> to vector<3x256xf32>
    %125 = arith.mulf %123, %124 : vector<3x256xf32>
    %126 = vector.shape_cast %125 : vector<3x256xf32> to vector<1x3x256xf32>
    %cst_32 = arith.constant dense<0.000000e+00> : vector<1xf32>
    %127 = vector.multi_reduction <add>, %126, %cst_32 [1, 2] : vector<1x3x256xf32> to vector<1xf32>
    %128 = vector.shape_cast %127 : vector<1xf32> to vector<1x1x1xf32>
    %129 = vector.extract %128[0, 0, 0] : f32 from vector<1x1x1xf32>
    %cst_33 = arith.constant 0.000000e+00 : f32
    %130 = arith.addf %cst_33, %129 : f32
    %131 = vector.extract_strided_slice %88 {offsets = [8, 0], sizes = [2, 256], strides = [1, 1]} : vector<10x256xf32> to vector<2x256xf32>
    %cst_34 = arith.constant 0.000000e+00 : f32
    %132 = vector.broadcast %cst_34 : f32 to vector<2x256xf32>
    %133 = arith.maximumf %131, %132 : vector<2x256xf32>
    %134 = arith.mulf %131, %23 : vector<2x256xf32>
    %135 = arith.subf %133, %134 : vector<2x256xf32>
    %136 = math.absf %131 : vector<2x256xf32>
    %cst_35 = arith.constant 0.000000e+00 : f32
    %137 = vector.broadcast %cst_35 : f32 to vector<2x256xf32>
    %138 = arith.subf %137, %136 : vector<2x256xf32>
    %139 = math.exp %138 : vector<2x256xf32>
    %140 = math.log1p %139 : vector<2x256xf32>
    %141 = arith.addf %135, %140 : vector<2x256xf32>
    %142 = vector.broadcast %6 : vector<1x256xf32> to vector<2x256xf32>
    %143 = arith.mulf %141, %142 : vector<2x256xf32>
    %144 = vector.shape_cast %143 : vector<2x256xf32> to vector<1x2x256xf32>
    %cst_36 = arith.constant dense<0.000000e+00> : vector<1xf32>
    %145 = vector.multi_reduction <add>, %144, %cst_36 [1, 2] : vector<1x2x256xf32> to vector<1xf32>
    %146 = vector.shape_cast %145 : vector<1xf32> to vector<1x1x1xf32>
    %147 = vector.extract %146[0, 0, 0] : f32 from vector<1x1x1xf32>
    %148 = arith.addf %130, %147 : f32
    %149 = arith.addf %86, %148 : f32
    %c1 = arith.constant 1 : index
    %c0_37 = arith.constant 0 : index
    %c0_38 = arith.constant 0 : index
    %150 = vector.load %arg1[%c1, %c0_37, %c0_38] : memref<3x10x256xf32, #tpu.memory_space<vmem>>, vector<1x10x256xf32>
    %151 = vector.shape_cast %150 : vector<1x10x256xf32> to vector<10x256xf32>
    %152 = vector.extract_strided_slice %151 {offsets = [4, 0], sizes = [1, 256], strides = [1, 1]} : vector<10x256xf32> to vector<1x256xf32>
    %cst_39 = arith.constant 1.000000e+00 : f32
    %153 = vector.broadcast %cst_39 : f32 to vector<1x256xf32>
    %154 = arith.cmpf oeq, %152, %153 : vector<1x256xf32>
    %155 = arith.extui %154 : vector<1x256xi1> to vector<1x256xi32>
    %156 = arith.sitofp %155 : vector<1x256xi32> to vector<1x256xf32>
    %cst_40 = arith.constant 0.000000e+00 : f32
    %157 = vector.broadcast %cst_40 : f32 to vector<1x256xf32>
    %158 = arith.cmpf oeq, %152, %157 : vector<1x256xf32>
    %159 = arith.extui %158 : vector<1x256xi1> to vector<1x256xi32>
    %160 = arith.sitofp %159 : vector<1x256xi32> to vector<1x256xf32>
    %161 = vector.shape_cast %156 : vector<1x256xf32> to vector<1x1x256xf32>
    %cst_41 = arith.constant dense<0.000000e+00> : vector<1xf32>
    %162 = vector.multi_reduction <add>, %161, %cst_41 [1, 2] : vector<1x1x256xf32> to vector<1xf32>
    %163 = vector.shape_cast %162 : vector<1xf32> to vector<1x1x1xf32>
    %164 = vector.extract %163[0, 0, 0] : f32 from vector<1x1x1xf32>
    %165 = arith.addf %15, %164 : f32
    %166 = vector.shape_cast %160 : vector<1x256xf32> to vector<1x1x256xf32>
    %cst_42 = arith.constant dense<0.000000e+00> : vector<1xf32>
    %167 = vector.multi_reduction <add>, %166, %cst_42 [1, 2] : vector<1x1x256xf32> to vector<1xf32>
    %168 = vector.shape_cast %167 : vector<1xf32> to vector<1x1x1xf32>
    %169 = vector.extract %168[0, 0, 0] : f32 from vector<1x1x1xf32>
    %170 = arith.addf %20, %169 : f32
    %171 = vector.extract_strided_slice %151 {offsets = [0, 0], sizes = [4, 256], strides = [1, 1]} : vector<10x256xf32> to vector<4x256xf32>
    %172 = vector.extract_strided_slice %151 {offsets = [4, 0], sizes = [4, 256], strides = [1, 1]} : vector<10x256xf32> to vector<4x256xf32>
    %173 = vector.extract_strided_slice %151 {offsets = [8, 0], sizes = [2, 256], strides = [1, 1]} : vector<10x256xf32> to vector<2x256xf32>
    %c1_43 = arith.constant 1 : index
    %c0_44 = arith.constant 0 : index
    %c0_45 = arith.constant 0 : index
    %174 = vector.load %arg2[%c1_43, %c0_44, %c0_45] : memref<3x10x256xf32, #tpu.memory_space<vmem>>, vector<1x10x256xf32>
    %175 = vector.shape_cast %174 : vector<1x10x256xf32> to vector<10x256xf32>
    %176 = vector.extract_strided_slice %175 {offsets = [0, 0], sizes = [4, 256], strides = [1, 1]} : vector<10x256xf32> to vector<4x256xf32>
    %177 = arith.subf %176, %171 : vector<4x256xf32>
    %178 = arith.mulf %177, %177 : vector<4x256xf32>
    %179 = vector.broadcast %156 : vector<1x256xf32> to vector<4x256xf32>
    %180 = arith.mulf %178, %179 : vector<4x256xf32>
    %181 = vector.shape_cast %180 : vector<4x256xf32> to vector<1x4x256xf32>
    %cst_46 = arith.constant dense<0.000000e+00> : vector<1xf32>
    %182 = vector.multi_reduction <add>, %181, %cst_46 [1, 2] : vector<1x4x256xf32> to vector<1xf32>
    %183 = vector.shape_cast %182 : vector<1xf32> to vector<1x1x1xf32>
    %184 = vector.extract %183[0, 0, 0] : f32 from vector<1x1x1xf32>
    %185 = arith.addf %98, %184 : f32
    %186 = vector.extract_strided_slice %175 {offsets = [4, 0], sizes = [4, 256], strides = [1, 1]} : vector<10x256xf32> to vector<4x256xf32>
    %cst_47 = arith.constant 0.000000e+00 : f32
    %187 = vector.broadcast %cst_47 : f32 to vector<4x256xf32>
    %188 = arith.maximumf %186, %187 : vector<4x256xf32>
    %189 = arith.mulf %186, %172 : vector<4x256xf32>
    %190 = arith.subf %188, %189 : vector<4x256xf32>
    %191 = math.absf %186 : vector<4x256xf32>
    %cst_48 = arith.constant 0.000000e+00 : f32
    %192 = vector.broadcast %cst_48 : f32 to vector<4x256xf32>
    %193 = arith.subf %192, %191 : vector<4x256xf32>
    %194 = math.exp %193 : vector<4x256xf32>
    %195 = math.log1p %194 : vector<4x256xf32>
    %196 = arith.addf %190, %195 : vector<4x256xf32>
    %197 = vector.extract_strided_slice %196 {offsets = [0, 0], sizes = [1, 256], strides = [1, 1]} : vector<4x256xf32> to vector<1x256xf32>
    %198 = arith.mulf %197, %156 : vector<1x256xf32>
    %199 = vector.shape_cast %198 : vector<1x256xf32> to vector<1x1x256xf32>
    %cst_49 = arith.constant dense<0.000000e+00> : vector<1xf32>
    %200 = vector.multi_reduction <add>, %199, %cst_49 [1, 2] : vector<1x1x256xf32> to vector<1xf32>
    %201 = vector.shape_cast %200 : vector<1xf32> to vector<1x1x1xf32>
    %202 = vector.extract %201[0, 0, 0] : f32 from vector<1x1x1xf32>
    %203 = arith.addf %116, %202 : f32
    %204 = arith.mulf %197, %160 : vector<1x256xf32>
    %205 = vector.shape_cast %204 : vector<1x256xf32> to vector<1x1x256xf32>
    %cst_50 = arith.constant dense<0.000000e+00> : vector<1xf32>
    %206 = vector.multi_reduction <add>, %205, %cst_50 [1, 2] : vector<1x1x256xf32> to vector<1xf32>
    %207 = vector.shape_cast %206 : vector<1xf32> to vector<1x1x1xf32>
    %208 = vector.extract %207[0, 0, 0] : f32 from vector<1x1x1xf32>
    %209 = arith.addf %122, %208 : f32
    %210 = vector.extract_strided_slice %196 {offsets = [1, 0], sizes = [3, 256], strides = [1, 1]} : vector<4x256xf32> to vector<3x256xf32>
    %211 = vector.broadcast %156 : vector<1x256xf32> to vector<3x256xf32>
    %212 = arith.mulf %210, %211 : vector<3x256xf32>
    %213 = vector.shape_cast %212 : vector<3x256xf32> to vector<1x3x256xf32>
    %cst_51 = arith.constant dense<0.000000e+00> : vector<1xf32>
    %214 = vector.multi_reduction <add>, %213, %cst_51 [1, 2] : vector<1x3x256xf32> to vector<1xf32>
    %215 = vector.shape_cast %214 : vector<1xf32> to vector<1x1x1xf32>
    %216 = vector.extract %215[0, 0, 0] : f32 from vector<1x1x1xf32>
    %cst_52 = arith.constant 0.000000e+00 : f32
    %217 = arith.addf %cst_52, %216 : f32
    %218 = vector.extract_strided_slice %175 {offsets = [8, 0], sizes = [2, 256], strides = [1, 1]} : vector<10x256xf32> to vector<2x256xf32>
    %cst_53 = arith.constant 0.000000e+00 : f32
    %219 = vector.broadcast %cst_53 : f32 to vector<2x256xf32>
    %220 = arith.maximumf %218, %219 : vector<2x256xf32>
    %221 = arith.mulf %218, %173 : vector<2x256xf32>
    %222 = arith.subf %220, %221 : vector<2x256xf32>
    %223 = math.absf %218 : vector<2x256xf32>
    %cst_54 = arith.constant 0.000000e+00 : f32
    %224 = vector.broadcast %cst_54 : f32 to vector<2x256xf32>
    %225 = arith.subf %224, %223 : vector<2x256xf32>
    %226 = math.exp %225 : vector<2x256xf32>
    %227 = math.log1p %226 : vector<2x256xf32>
    %228 = arith.addf %222, %227 : vector<2x256xf32>
    %229 = vector.broadcast %156 : vector<1x256xf32> to vector<2x256xf32>
    %230 = arith.mulf %228, %229 : vector<2x256xf32>
    %231 = vector.shape_cast %230 : vector<2x256xf32> to vector<1x2x256xf32>
    %cst_55 = arith.constant dense<0.000000e+00> : vector<1xf32>
    %232 = vector.multi_reduction <add>, %231, %cst_55 [1, 2] : vector<1x2x256xf32> to vector<1xf32>
    %233 = vector.shape_cast %232 : vector<1xf32> to vector<1x1x1xf32>
    %234 = vector.extract %233[0, 0, 0] : f32 from vector<1x1x1xf32>
    %235 = arith.addf %217, %234 : f32
    %236 = arith.addf %149, %235 : f32
    %c1_56 = arith.constant 1 : index
    %c0_57 = arith.constant 0 : index
    %c0_58 = arith.constant 0 : index
    %237 = vector.load %arg3[%c1_56, %c0_57, %c0_58] : memref<3x10x256xf32, #tpu.memory_space<vmem>>, vector<1x10x256xf32>
    %238 = vector.shape_cast %237 : vector<1x10x256xf32> to vector<10x256xf32>
    %239 = vector.extract_strided_slice %238 {offsets = [0, 0], sizes = [4, 256], strides = [1, 1]} : vector<10x256xf32> to vector<4x256xf32>
    %240 = arith.subf %239, %171 : vector<4x256xf32>
    %241 = arith.mulf %240, %240 : vector<4x256xf32>
    %242 = vector.broadcast %156 : vector<1x256xf32> to vector<4x256xf32>
    %243 = arith.mulf %241, %242 : vector<4x256xf32>
    %244 = vector.shape_cast %243 : vector<4x256xf32> to vector<1x4x256xf32>
    %cst_59 = arith.constant dense<0.000000e+00> : vector<1xf32>
    %245 = vector.multi_reduction <add>, %244, %cst_59 [1, 2] : vector<1x4x256xf32> to vector<1xf32>
    %246 = vector.shape_cast %245 : vector<1xf32> to vector<1x1x1xf32>
    %247 = vector.extract %246[0, 0, 0] : f32 from vector<1x1x1xf32>
    %248 = arith.addf %185, %247 : f32
    %249 = vector.extract_strided_slice %238 {offsets = [4, 0], sizes = [4, 256], strides = [1, 1]} : vector<10x256xf32> to vector<4x256xf32>
    %cst_60 = arith.constant 0.000000e+00 : f32
    %250 = vector.broadcast %cst_60 : f32 to vector<4x256xf32>
    %251 = arith.maximumf %249, %250 : vector<4x256xf32>
    %252 = arith.mulf %249, %172 : vector<4x256xf32>
    %253 = arith.subf %251, %252 : vector<4x256xf32>
    %254 = math.absf %249 : vector<4x256xf32>
    %cst_61 = arith.constant 0.000000e+00 : f32
    %255 = vector.broadcast %cst_61 : f32 to vector<4x256xf32>
    %256 = arith.subf %255, %254 : vector<4x256xf32>
    %257 = math.exp %256 : vector<4x256xf32>
    %258 = math.log1p %257 : vector<4x256xf32>
    %259 = arith.addf %253, %258 : vector<4x256xf32>
    %260 = vector.extract_strided_slice %259 {offsets = [0, 0], sizes = [1, 256], strides = [1, 1]} : vector<4x256xf32> to vector<1x256xf32>
    %261 = arith.mulf %260, %156 : vector<1x256xf32>
    %262 = vector.shape_cast %261 : vector<1x256xf32> to vector<1x1x256xf32>
    %cst_62 = arith.constant dense<0.000000e+00> : vector<1xf32>
    %263 = vector.multi_reduction <add>, %262, %cst_62 [1, 2] : vector<1x1x256xf32> to vector<1xf32>
    %264 = vector.shape_cast %263 : vector<1xf32> to vector<1x1x1xf32>
    %265 = vector.extract %264[0, 0, 0] : f32 from vector<1x1x1xf32>
    %266 = arith.addf %203, %265 : f32
    %267 = arith.mulf %260, %160 : vector<1x256xf32>
    %268 = vector.shape_cast %267 : vector<1x256xf32> to vector<1x1x256xf32>
    %cst_63 = arith.constant dense<0.000000e+00> : vector<1xf32>
    %269 = vector.multi_reduction <add>, %268, %cst_63 [1, 2] : vector<1x1x256xf32> to vector<1xf32>
    %270 = vector.shape_cast %269 : vector<1xf32> to vector<1x1x1xf32>
    %271 = vector.extract %270[0, 0, 0] : f32 from vector<1x1x1xf32>
    %272 = arith.addf %209, %271 : f32
    %273 = vector.extract_strided_slice %259 {offsets = [1, 0], sizes = [3, 256], strides = [1, 1]} : vector<4x256xf32> to vector<3x256xf32>
    %274 = vector.broadcast %156 : vector<1x256xf32> to vector<3x256xf32>
    %275 = arith.mulf %273, %274 : vector<3x256xf32>
    %276 = vector.shape_cast %275 : vector<3x256xf32> to vector<1x3x256xf32>
    %cst_64 = arith.constant dense<0.000000e+00> : vector<1xf32>
    %277 = vector.multi_reduction <add>, %276, %cst_64 [1, 2] : vector<1x3x256xf32> to vector<1xf32>
    %278 = vector.shape_cast %277 : vector<1xf32> to vector<1x1x1xf32>
    %279 = vector.extract %278[0, 0, 0] : f32 from vector<1x1x1xf32>
    %cst_65 = arith.constant 0.000000e+00 : f32
    %280 = arith.addf %cst_65, %279 : f32
    %281 = vector.extract_strided_slice %238 {offsets = [8, 0], sizes = [2, 256], strides = [1, 1]} : vector<10x256xf32> to vector<2x256xf32>
    %cst_66 = arith.constant 0.000000e+00 : f32
    %282 = vector.broadcast %cst_66 : f32 to vector<2x256xf32>
    %283 = arith.maximumf %281, %282 : vector<2x256xf32>
    %284 = arith.mulf %281, %173 : vector<2x256xf32>
    %285 = arith.subf %283, %284 : vector<2x256xf32>
    %286 = math.absf %281 : vector<2x256xf32>
    %cst_67 = arith.constant 0.000000e+00 : f32
    %287 = vector.broadcast %cst_67 : f32 to vector<2x256xf32>
    %288 = arith.subf %287, %286 : vector<2x256xf32>
    %289 = math.exp %288 : vector<2x256xf32>
    %290 = math.log1p %289 : vector<2x256xf32>
    %291 = arith.addf %285, %290 : vector<2x256xf32>
    %292 = vector.broadcast %156 : vector<1x256xf32> to vector<2x256xf32>
    %293 = arith.mulf %291, %292 : vector<2x256xf32>
    %294 = vector.shape_cast %293 : vector<2x256xf32> to vector<1x2x256xf32>
    %cst_68 = arith.constant dense<0.000000e+00> : vector<1xf32>
    %295 = vector.multi_reduction <add>, %294, %cst_68 [1, 2] : vector<1x2x256xf32> to vector<1xf32>
    %296 = vector.shape_cast %295 : vector<1xf32> to vector<1x1x1xf32>
    %297 = vector.extract %296[0, 0, 0] : f32 from vector<1x1x1xf32>
    %298 = arith.addf %280, %297 : f32
    %299 = arith.addf %236, %298 : f32
    %c2 = arith.constant 2 : index
    %c0_69 = arith.constant 0 : index
    %c0_70 = arith.constant 0 : index
    %300 = vector.load %arg1[%c2, %c0_69, %c0_70] : memref<3x10x256xf32, #tpu.memory_space<vmem>>, vector<1x10x256xf32>
    %301 = vector.shape_cast %300 : vector<1x10x256xf32> to vector<10x256xf32>
    %302 = vector.extract_strided_slice %301 {offsets = [4, 0], sizes = [1, 256], strides = [1, 1]} : vector<10x256xf32> to vector<1x256xf32>
    %cst_71 = arith.constant 1.000000e+00 : f32
    %303 = vector.broadcast %cst_71 : f32 to vector<1x256xf32>
    %304 = arith.cmpf oeq, %302, %303 : vector<1x256xf32>
    %305 = arith.extui %304 : vector<1x256xi1> to vector<1x256xi32>
    %306 = arith.sitofp %305 : vector<1x256xi32> to vector<1x256xf32>
    %cst_72 = arith.constant 0.000000e+00 : f32
    %307 = vector.broadcast %cst_72 : f32 to vector<1x256xf32>
    %308 = arith.cmpf oeq, %302, %307 : vector<1x256xf32>
    %309 = arith.extui %308 : vector<1x256xi1> to vector<1x256xi32>
    %310 = arith.sitofp %309 : vector<1x256xi32> to vector<1x256xf32>
    %311 = vector.shape_cast %306 : vector<1x256xf32> to vector<1x1x256xf32>
    %cst_73 = arith.constant dense<0.000000e+00> : vector<1xf32>
    %312 = vector.multi_reduction <add>, %311, %cst_73 [1, 2] : vector<1x1x256xf32> to vector<1xf32>
    %313 = vector.shape_cast %312 : vector<1xf32> to vector<1x1x1xf32>
    %314 = vector.extract %313[0, 0, 0] : f32 from vector<1x1x1xf32>
    %315 = arith.addf %165, %314 : f32
    %316 = vector.shape_cast %310 : vector<1x256xf32> to vector<1x1x256xf32>
    %cst_74 = arith.constant dense<0.000000e+00> : vector<1xf32>
    %317 = vector.multi_reduction <add>, %316, %cst_74 [1, 2] : vector<1x1x256xf32> to vector<1xf32>
    %318 = vector.shape_cast %317 : vector<1xf32> to vector<1x1x1xf32>
    %319 = vector.extract %318[0, 0, 0] : f32 from vector<1x1x1xf32>
    %320 = arith.addf %170, %319 : f32
    %321 = vector.extract_strided_slice %301 {offsets = [0, 0], sizes = [4, 256], strides = [1, 1]} : vector<10x256xf32> to vector<4x256xf32>
    %322 = vector.extract_strided_slice %301 {offsets = [4, 0], sizes = [4, 256], strides = [1, 1]} : vector<10x256xf32> to vector<4x256xf32>
    %323 = vector.extract_strided_slice %301 {offsets = [8, 0], sizes = [2, 256], strides = [1, 1]} : vector<10x256xf32> to vector<2x256xf32>
    %c2_75 = arith.constant 2 : index
    %c0_76 = arith.constant 0 : index
    %c0_77 = arith.constant 0 : index
    %324 = vector.load %arg2[%c2_75, %c0_76, %c0_77] : memref<3x10x256xf32, #tpu.memory_space<vmem>>, vector<1x10x256xf32>
    %325 = vector.shape_cast %324 : vector<1x10x256xf32> to vector<10x256xf32>
    %326 = vector.extract_strided_slice %325 {offsets = [0, 0], sizes = [4, 256], strides = [1, 1]} : vector<10x256xf32> to vector<4x256xf32>
    %327 = arith.subf %326, %321 : vector<4x256xf32>
    %328 = arith.mulf %327, %327 : vector<4x256xf32>
    %329 = vector.broadcast %306 : vector<1x256xf32> to vector<4x256xf32>
    %330 = arith.mulf %328, %329 : vector<4x256xf32>
    %331 = vector.shape_cast %330 : vector<4x256xf32> to vector<1x4x256xf32>
    %cst_78 = arith.constant dense<0.000000e+00> : vector<1xf32>
    %332 = vector.multi_reduction <add>, %331, %cst_78 [1, 2] : vector<1x4x256xf32> to vector<1xf32>
    %333 = vector.shape_cast %332 : vector<1xf32> to vector<1x1x1xf32>
    %334 = vector.extract %333[0, 0, 0] : f32 from vector<1x1x1xf32>
    %335 = arith.addf %248, %334 : f32
    %336 = vector.extract_strided_slice %325 {offsets = [4, 0], sizes = [4, 256], strides = [1, 1]} : vector<10x256xf32> to vector<4x256xf32>
    %cst_79 = arith.constant 0.000000e+00 : f32
    %337 = vector.broadcast %cst_79 : f32 to vector<4x256xf32>
    %338 = arith.maximumf %336, %337 : vector<4x256xf32>
    %339 = arith.mulf %336, %322 : vector<4x256xf32>
    %340 = arith.subf %338, %339 : vector<4x256xf32>
    %341 = math.absf %336 : vector<4x256xf32>
    %cst_80 = arith.constant 0.000000e+00 : f32
    %342 = vector.broadcast %cst_80 : f32 to vector<4x256xf32>
    %343 = arith.subf %342, %341 : vector<4x256xf32>
    %344 = math.exp %343 : vector<4x256xf32>
    %345 = math.log1p %344 : vector<4x256xf32>
    %346 = arith.addf %340, %345 : vector<4x256xf32>
    %347 = vector.extract_strided_slice %346 {offsets = [0, 0], sizes = [1, 256], strides = [1, 1]} : vector<4x256xf32> to vector<1x256xf32>
    %348 = arith.mulf %347, %306 : vector<1x256xf32>
    %349 = vector.shape_cast %348 : vector<1x256xf32> to vector<1x1x256xf32>
    %cst_81 = arith.constant dense<0.000000e+00> : vector<1xf32>
    %350 = vector.multi_reduction <add>, %349, %cst_81 [1, 2] : vector<1x1x256xf32> to vector<1xf32>
    %351 = vector.shape_cast %350 : vector<1xf32> to vector<1x1x1xf32>
    %352 = vector.extract %351[0, 0, 0] : f32 from vector<1x1x1xf32>
    %353 = arith.addf %266, %352 : f32
    %354 = arith.mulf %347, %310 : vector<1x256xf32>
    %355 = vector.shape_cast %354 : vector<1x256xf32> to vector<1x1x256xf32>
    %cst_82 = arith.constant dense<0.000000e+00> : vector<1xf32>
    %356 = vector.multi_reduction <add>, %355, %cst_82 [1, 2] : vector<1x1x256xf32> to vector<1xf32>
    %357 = vector.shape_cast %356 : vector<1xf32> to vector<1x1x1xf32>
    %358 = vector.extract %357[0, 0, 0] : f32 from vector<1x1x1xf32>
    %359 = arith.addf %272, %358 : f32
    %360 = vector.extract_strided_slice %346 {offsets = [1, 0], sizes = [3, 256], strides = [1, 1]} : vector<4x256xf32> to vector<3x256xf32>
    %361 = vector.broadcast %306 : vector<1x256xf32> to vector<3x256xf32>
    %362 = arith.mulf %360, %361 : vector<3x256xf32>
    %363 = vector.shape_cast %362 : vector<3x256xf32> to vector<1x3x256xf32>
    %cst_83 = arith.constant dense<0.000000e+00> : vector<1xf32>
    %364 = vector.multi_reduction <add>, %363, %cst_83 [1, 2] : vector<1x3x256xf32> to vector<1xf32>
    %365 = vector.shape_cast %364 : vector<1xf32> to vector<1x1x1xf32>
    %366 = vector.extract %365[0, 0, 0] : f32 from vector<1x1x1xf32>
    %cst_84 = arith.constant 0.000000e+00 : f32
    %367 = arith.addf %cst_84, %366 : f32
    %368 = vector.extract_strided_slice %325 {offsets = [8, 0], sizes = [2, 256], strides = [1, 1]} : vector<10x256xf32> to vector<2x256xf32>
    %cst_85 = arith.constant 0.000000e+00 : f32
    %369 = vector.broadcast %cst_85 : f32 to vector<2x256xf32>
    %370 = arith.maximumf %368, %369 : vector<2x256xf32>
    %371 = arith.mulf %368, %323 : vector<2x256xf32>
    %372 = arith.subf %370, %371 : vector<2x256xf32>
    %373 = math.absf %368 : vector<2x256xf32>
    %cst_86 = arith.constant 0.000000e+00 : f32
    %374 = vector.broadcast %cst_86 : f32 to vector<2x256xf32>
    %375 = arith.subf %374, %373 : vector<2x256xf32>
    %376 = math.exp %375 : vector<2x256xf32>
    %377 = math.log1p %376 : vector<2x256xf32>
    %378 = arith.addf %372, %377 : vector<2x256xf32>
    %379 = vector.broadcast %306 : vector<1x256xf32> to vector<2x256xf32>
    %380 = arith.mulf %378, %379 : vector<2x256xf32>
    %381 = vector.shape_cast %380 : vector<2x256xf32> to vector<1x2x256xf32>
    %cst_87 = arith.constant dense<0.000000e+00> : vector<1xf32>
    %382 = vector.multi_reduction <add>, %381, %cst_87 [1, 2] : vector<1x2x256xf32> to vector<1xf32>
    %383 = vector.shape_cast %382 : vector<1xf32> to vector<1x1x1xf32>
    %384 = vector.extract %383[0, 0, 0] : f32 from vector<1x1x1xf32>
    %385 = arith.addf %367, %384 : f32
    %386 = arith.addf %299, %385 : f32
    %c2_88 = arith.constant 2 : index
    %c0_89 = arith.constant 0 : index
    %c0_90 = arith.constant 0 : index
    %387 = vector.load %arg3[%c2_88, %c0_89, %c0_90] : memref<3x10x256xf32, #tpu.memory_space<vmem>>, vector<1x10x256xf32>
    %388 = vector.shape_cast %387 : vector<1x10x256xf32> to vector<10x256xf32>
    %389 = vector.extract_strided_slice %388 {offsets = [0, 0], sizes = [4, 256], strides = [1, 1]} : vector<10x256xf32> to vector<4x256xf32>
    %390 = arith.subf %389, %321 : vector<4x256xf32>
    %391 = arith.mulf %390, %390 : vector<4x256xf32>
    %392 = vector.broadcast %306 : vector<1x256xf32> to vector<4x256xf32>
    %393 = arith.mulf %391, %392 : vector<4x256xf32>
    %394 = vector.shape_cast %393 : vector<4x256xf32> to vector<1x4x256xf32>
    %cst_91 = arith.constant dense<0.000000e+00> : vector<1xf32>
    %395 = vector.multi_reduction <add>, %394, %cst_91 [1, 2] : vector<1x4x256xf32> to vector<1xf32>
    %396 = vector.shape_cast %395 : vector<1xf32> to vector<1x1x1xf32>
    %397 = vector.extract %396[0, 0, 0] : f32 from vector<1x1x1xf32>
    %398 = arith.addf %335, %397 : f32
    %399 = vector.extract_strided_slice %388 {offsets = [4, 0], sizes = [4, 256], strides = [1, 1]} : vector<10x256xf32> to vector<4x256xf32>
    %cst_92 = arith.constant 0.000000e+00 : f32
    %400 = vector.broadcast %cst_92 : f32 to vector<4x256xf32>
    %401 = arith.maximumf %399, %400 : vector<4x256xf32>
    %402 = arith.mulf %399, %322 : vector<4x256xf32>
    %403 = arith.subf %401, %402 : vector<4x256xf32>
    %404 = math.absf %399 : vector<4x256xf32>
    %cst_93 = arith.constant 0.000000e+00 : f32
    %405 = vector.broadcast %cst_93 : f32 to vector<4x256xf32>
    %406 = arith.subf %405, %404 : vector<4x256xf32>
    %407 = math.exp %406 : vector<4x256xf32>
    %408 = math.log1p %407 : vector<4x256xf32>
    %409 = arith.addf %403, %408 : vector<4x256xf32>
    %410 = vector.extract_strided_slice %409 {offsets = [0, 0], sizes = [1, 256], strides = [1, 1]} : vector<4x256xf32> to vector<1x256xf32>
    %411 = arith.mulf %410, %306 : vector<1x256xf32>
    %412 = vector.shape_cast %411 : vector<1x256xf32> to vector<1x1x256xf32>
    %cst_94 = arith.constant dense<0.000000e+00> : vector<1xf32>
    %413 = vector.multi_reduction <add>, %412, %cst_94 [1, 2] : vector<1x1x256xf32> to vector<1xf32>
    %414 = vector.shape_cast %413 : vector<1xf32> to vector<1x1x1xf32>
    %415 = vector.extract %414[0, 0, 0] : f32 from vector<1x1x1xf32>
    %416 = arith.addf %353, %415 : f32
    %417 = arith.mulf %410, %310 : vector<1x256xf32>
    %418 = vector.shape_cast %417 : vector<1x256xf32> to vector<1x1x256xf32>
    %cst_95 = arith.constant dense<0.000000e+00> : vector<1xf32>
    %419 = vector.multi_reduction <add>, %418, %cst_95 [1, 2] : vector<1x1x256xf32> to vector<1xf32>
    %420 = vector.shape_cast %419 : vector<1xf32> to vector<1x1x1xf32>
    %421 = vector.extract %420[0, 0, 0] : f32 from vector<1x1x1xf32>
    %422 = arith.addf %359, %421 : f32
    %423 = vector.extract_strided_slice %409 {offsets = [1, 0], sizes = [3, 256], strides = [1, 1]} : vector<4x256xf32> to vector<3x256xf32>
    %424 = vector.broadcast %306 : vector<1x256xf32> to vector<3x256xf32>
    %425 = arith.mulf %423, %424 : vector<3x256xf32>
    %426 = vector.shape_cast %425 : vector<3x256xf32> to vector<1x3x256xf32>
    %cst_96 = arith.constant dense<0.000000e+00> : vector<1xf32>
    %427 = vector.multi_reduction <add>, %426, %cst_96 [1, 2] : vector<1x3x256xf32> to vector<1xf32>
    %428 = vector.shape_cast %427 : vector<1xf32> to vector<1x1x1xf32>
    %429 = vector.extract %428[0, 0, 0] : f32 from vector<1x1x1xf32>
    %cst_97 = arith.constant 0.000000e+00 : f32
    %430 = arith.addf %cst_97, %429 : f32
    %431 = vector.extract_strided_slice %388 {offsets = [8, 0], sizes = [2, 256], strides = [1, 1]} : vector<10x256xf32> to vector<2x256xf32>
    %cst_98 = arith.constant 0.000000e+00 : f32
    %432 = vector.broadcast %cst_98 : f32 to vector<2x256xf32>
    %433 = arith.maximumf %431, %432 : vector<2x256xf32>
    %434 = arith.mulf %431, %323 : vector<2x256xf32>
    %435 = arith.subf %433, %434 : vector<2x256xf32>
    %436 = math.absf %431 : vector<2x256xf32>
    %cst_99 = arith.constant 0.000000e+00 : f32
    %437 = vector.broadcast %cst_99 : f32 to vector<2x256xf32>
    %438 = arith.subf %437, %436 : vector<2x256xf32>
    %439 = math.exp %438 : vector<2x256xf32>
    %440 = math.log1p %439 : vector<2x256xf32>
    %441 = arith.addf %435, %440 : vector<2x256xf32>
    %442 = vector.broadcast %306 : vector<1x256xf32> to vector<2x256xf32>
    %443 = arith.mulf %441, %442 : vector<2x256xf32>
    %444 = vector.shape_cast %443 : vector<2x256xf32> to vector<1x2x256xf32>
    %cst_100 = arith.constant dense<0.000000e+00> : vector<1xf32>
    %445 = vector.multi_reduction <add>, %444, %cst_100 [1, 2] : vector<1x2x256xf32> to vector<1xf32>
    %446 = vector.shape_cast %445 : vector<1xf32> to vector<1x1x1xf32>
    %447 = vector.extract %446[0, 0, 0] : f32 from vector<1x1x1xf32>
    %448 = arith.addf %430, %447 : f32
    %449 = arith.addf %386, %448 : f32
    %cst_101 = arith.constant 0.000000e+00 : f32
    %450 = vector.broadcast %cst_101 : f32 to vector<1x128xf32>
    %451 = vector.broadcast %398 : f32 to vector<1x128xf32>
    %452 = arith.addf %450, %451 : vector<1x128xf32>
    %c0_102 = arith.constant 0 : index
    %c0_103 = arith.constant 0 : index
    %c0_104 = arith.constant 0 : index
    %453 = vector.load %arg4[%c0_102, %c0_103, %c0_104] : memref<1x8x128xf32, #tpu.memory_space<vmem>>, vector<1x1x128xf32>
    %454 = vector.shape_cast %453 : vector<1x1x128xf32> to vector<1x128xf32>
    %455 = vector.shape_cast %452 : vector<1x128xf32> to vector<1x1x128xf32>
    tpu.vector_store %arg4[%c0_102, %c0_103, %c0_104], %455 {strides = array<i32>} : memref<1x8x128xf32, #tpu.memory_space<vmem>>, vector<1x1x128xf32>,
    %456 = vector.broadcast %416 : f32 to vector<1x128xf32>
    %457 = arith.addf %450, %456 : vector<1x128xf32>
    %c0_105 = arith.constant 0 : index
    %c1_106 = arith.constant 1 : index
    %c0_107 = arith.constant 0 : index
    %458 = vector.load %arg4[%c0_105, %c1_106, %c0_107] : memref<1x8x128xf32, #tpu.memory_space<vmem>>, vector<1x1x128xf32>
    %459 = vector.shape_cast %458 : vector<1x1x128xf32> to vector<1x128xf32>
    %460 = vector.shape_cast %457 : vector<1x128xf32> to vector<1x1x128xf32>
    tpu.vector_store %arg4[%c0_105, %c1_106, %c0_107], %460 {strides = array<i32>} : memref<1x8x128xf32, #tpu.memory_space<vmem>>, vector<1x1x128xf32>,
    %461 = vector.broadcast %449 : f32 to vector<1x128xf32>
    %462 = arith.addf %450, %461 : vector<1x128xf32>
    %c0_108 = arith.constant 0 : index
    %c2_109 = arith.constant 2 : index
    %c0_110 = arith.constant 0 : index
    %463 = vector.load %arg4[%c0_108, %c2_109, %c0_110] : memref<1x8x128xf32, #tpu.memory_space<vmem>>, vector<1x1x128xf32>
    %464 = vector.shape_cast %463 : vector<1x1x128xf32> to vector<1x128xf32>
    %465 = vector.shape_cast %462 : vector<1x128xf32> to vector<1x1x128xf32>
    tpu.vector_store %arg4[%c0_108, %c2_109, %c0_110], %465 {strides = array<i32>} : memref<1x8x128xf32, #tpu.memory_space<vmem>>, vector<1x1x128xf32>,
    %466 = vector.broadcast %422 : f32 to vector<1x128xf32>
    %467 = arith.addf %450, %466 : vector<1x128xf32>
    %c0_111 = arith.constant 0 : index
    %c3 = arith.constant 3 : index
    %c0_112 = arith.constant 0 : index
    %468 = vector.load %arg4[%c0_111, %c3, %c0_112] : memref<1x8x128xf32, #tpu.memory_space<vmem>>, vector<1x1x128xf32>
    %469 = vector.shape_cast %468 : vector<1x1x128xf32> to vector<1x128xf32>
    %470 = vector.shape_cast %467 : vector<1x128xf32> to vector<1x1x128xf32>
    tpu.vector_store %arg4[%c0_111, %c3, %c0_112], %470 {strides = array<i32>} : memref<1x8x128xf32, #tpu.memory_space<vmem>>, vector<1x1x128xf32>,
    %471 = vector.broadcast %315 : f32 to vector<1x128xf32>
    %472 = arith.addf %450, %471 : vector<1x128xf32>
    %c0_113 = arith.constant 0 : index
    %c4 = arith.constant 4 : index
    %c0_114 = arith.constant 0 : index
    %473 = vector.load %arg4[%c0_113, %c4, %c0_114] : memref<1x8x128xf32, #tpu.memory_space<vmem>>, vector<1x1x128xf32>
    %474 = vector.shape_cast %473 : vector<1x1x128xf32> to vector<1x128xf32>
    %475 = vector.shape_cast %472 : vector<1x128xf32> to vector<1x1x128xf32>
    tpu.vector_store %arg4[%c0_113, %c4, %c0_114], %475 {strides = array<i32>} : memref<1x8x128xf32, #tpu.memory_space<vmem>>, vector<1x1x128xf32>,
    %476 = vector.broadcast %320 : f32 to vector<1x128xf32>
    %477 = arith.addf %450, %476 : vector<1x128xf32>
    %c0_115 = arith.constant 0 : index
    %c5 = arith.constant 5 : index
    %c0_116 = arith.constant 0 : index
    %478 = vector.load %arg4[%c0_115, %c5, %c0_116] : memref<1x8x128xf32, #tpu.memory_space<vmem>>, vector<1x1x128xf32>
    %479 = vector.shape_cast %478 : vector<1x1x128xf32> to vector<1x128xf32>
    %480 = vector.shape_cast %477 : vector<1x128xf32> to vector<1x1x128xf32>
    tpu.vector_store %arg4[%c0_115, %c5, %c0_116], %480 {strides = array<i32>} : memref<1x8x128xf32, #tpu.memory_space<vmem>>, vector<1x1x128xf32>,
    %cst_117 = arith.constant 0.000000e+00 : f32
    %481 = vector.broadcast %cst_117 : f32 to vector<2x128xf32>
    %c0_118 = arith.constant 0 : index
    %c6 = arith.constant 6 : index
    %c0_119 = arith.constant 0 : index
    %482 = vector.load %arg4[%c0_118, %c6, %c0_119] : memref<1x8x128xf32, #tpu.memory_space<vmem>>, vector<1x2x128xf32>
    %483 = vector.shape_cast %482 : vector<1x2x128xf32> to vector<2x128xf32>
    %484 = vector.shape_cast %481 : vector<2x128xf32> to vector<1x2x128xf32>
    tpu.vector_store %arg4[%c0_118, %c6, %c0_119], %484 {strides = array<i32>} : memref<1x8x128xf32, #tpu.memory_space<vmem>>, vector<1x2x128xf32>,
    return
  }
  func.func @transform_0(%arg0: i32) -> (i32, i32, i32) {
    %c0_i32 = arith.constant 0 : i32
    %c0_i32_0 = arith.constant 0 : i32
    %c0_i32_1 = arith.constant 0 : i32
    return %arg0, %c0_i32, %c0_i32_0 : i32, i32, i32
  }
  func.func @transform_1(%arg0: i32) -> (i32, i32, i32) {
    %c0_i32 = arith.constant 0 : i32
    %c0_i32_0 = arith.constant 0 : i32
    %c0_i32_1 = arith.constant 0 : i32
    return %arg0, %c0_i32, %c0_i32_0 : i32, i32, i32
  }
  func.func @transform_2(%arg0: i32) -> (i32, i32, i32) {
    %c0_i32 = arith.constant 0 : i32
    %c0_i32_0 = arith.constant 0 : i32
    %c0_i32_1 = arith.constant 0 : i32
    return %arg0, %c0_i32, %c0_i32_0 : i32, i32, i32
  }
  func.func @transform_3(%arg0: i32) -> (i32, i32, i32) {
    %c0_i32 = arith.constant 0 : i32
    %c0_i32_0 = arith.constant 0 : i32
    %c0_i32_1 = arith.constant 0 : i32
    return %arg0, %c0_i32, %c0_i32_0 : i32, i32, i32
  }
}

</mosaic_0001>

<bundles_post_ra>
// kernel: yolo_loss.1
= control target key start
LH: loop header
LB: loop body
LE: loop exit
PB: predicated region body
PF: predicated region fallthrough
CT: control target
= control target key end

     0   :  { %s1797_s12 = smov 0   ;;  %s2571_s0 = inlined_call_operand.vmem [shape: f32[6,10,256], index: 0, kind: input, shape index: {}]   ;;  %s2572_s1 = inlined_call_operand.vmem [shape: f32[6,10,256], index: 1, kind: input, shape index: {}]   ;;  %s2573_s2 = inlined_call_operand.vmem [shape: f32[6,10,256], index: 2, kind: input, shape index: {}]   ;;  %s2574_s3 = inlined_call_operand.vmem [shape: f32[2,8,128], index: 3, kind: output, shape index: {}]  }
   0x1   :  { %2609 = sst [smem:[#allocation21_spill]] %s2571_s0 }
   0x2   :  { %2610 = sst [smem:[#allocation22_spill]] %s2572_s1 }
   0x3   :  { %2611 = sst [smem:[#allocation23_spill]] %s2573_s2 }
   0x4   :  { %2612 = sst [smem:[#allocation24_spill]] %s2574_s3 }
   0x5 LB: > { %2613 = sst [smem:[#allocation2_spill]] %s1774_s12  ;;  %s1803_s13 = sadd.s32 4294967295, %s1774_s12   ;;  %s1774_s12 = sphi %s1797_s12, %s13_s12  }
   0x6   : > { %p1540_p0 = scmp.ge.s32.totalorder %s1774_s12, 1  ;;  %p163_p1 = scmp.lt.s32.totalorder %s1774_s12, 3 }
   0x8   : > { %p164_p2 = pnand %p1540_p0, %p163_p1 }
   0xa   : > { %167 = sbr.rel (%p164_p2) target bundleno = 415 (0x19f), region = 32 }
  0x11   : > { %s199_s14 = smul.u32 3, %s1803_s13  ;;  %v287_v0 = vlaneseq  ;;  %s2614_s0 = sld [smem:[#allocation21_spill]]  ;;  %vm246_vm0 = vcmask 1040384   ;;  %v2575_v8 = vmov 0.0   ;;  %vm297_vm9 = vcmask 1043456  }
  0x12   : > { %s2622_s1 = sld [smem:[#allocation22_spill]]  ;;  %s2624_s2 = sld [smem:[#allocation23_spill]] }
  0x13   : > { %p200_p3 = scmp.lt.s32.totalorder %s199_s14, 5  ;;  %v288_v1 = vshrl.u32 %v287_v0, 7  ;;  %p220_p4 = scmp.lt.s32.totalorder %s1803_s13, 1 }
  0x14   : > { %s2698_s3 = sld [smem:[#allocation24_spill]] }
  0x15   : > { %s2704_s14 = smov (!%p200_p3, %s199_s14), 5  ;;  %v1825_v5 = vsub.s32 4, %v288_v1  ;;  %s2706_s13 = smov (!%p220_p4, %s1803_s13), 1 }
  0x16   : > { %s1808_s15 = sshll.u32 %s2704_s14, 5  ;;  %s1547_s25 = sshll.u32 %s2706_s13, 3 }
  0x17   : > { %s1814_s18 = scalar_lea.vmem %s2614_s0, %s1808_s15  ;;  %2617 = vst [vmem:[#allocation5_spill] sm:$0xff] %v1825_v5 }
  0x18   : > { %v1817_v2 = vld [vmem:[%s1814_s18 + $0x20] sm:$0xff]  ;;  %v1820_v3 = vld [vmem:[%s1814_s18 + $0x28] sm:$0xff]  ;;  %s1880_s21 = scalar_lea.vmem %s2622_s1, %s1808_s15  ;;  %s1921_s24 = scalar_lea.vmem %s2624_s2, %s1808_s15 }
  0x19   : > { %2615 = vst [vmem:[#allocation3_spill] sm:$0xff] %v1817_v2  ;;  %2616 = vst [vmem:[#allocation4_spill] sm:$0xff] %v1820_v3  ;;  %v1823_v4 = vld [vmem:[%s1814_s18] sm:$0xff]  ;;  %vm641_vm1 = vcmp.eq.f32.partialorder %v1817_v2, 0.0  ;;  %vm642_vm2 = vcmp.eq.f32.partialorder %v1820_v3, 0.0  ;;  %v1830_v6 = vld [vmem:[%s1814_s18 + $0x8] sm:$0xff] }
  0x1a   : > { %vm228_vm3 = vcmp.eq.f32.partialorder %v1823_v4, 1.0  ;;  %v1834_v7 = vld [vmem:[%s1814_s18 + $0x40] sm:$0xff]  ;;  %v1837_v9 = vsel %vm641_vm1, 1.0, %v2575_v8  ;;  %v1840_v10 = vsel %vm642_vm2, 1.0, %v2575_v8  ;;  %vm229_vm4 = vcmp.eq.f32.partialorder %v1830_v6, 1.0  ;;  %v1847_v12 = vld [vmem:[%s1814_s18 + $0x48] sm:$0xff]  ;;  %s2458_s28 = scalar_lea.vmem %s2698_s3, %s1547_s25 }
  0x1b   : > { %2618 = vst [vmem:[#allocation6_spill] sm:$0xff] %v1837_v9  ;;  %2619 = vst [vmem:[#allocation7_spill] sm:$0xff] %v1840_v10  ;;  %v1844_v11 = vsel %vm228_vm3, 1.0, %v2575_v8  ;;  %v668_v13 = vrot.slane %v1837_v9, 4  ;;  %v669_v14 = vrot.slane %v1840_v10, 4  ;;  %v1852_v15 = vsel %vm229_vm4, 1.0, %v2575_v8 }
  0x1c   : > { %v242_v16 = vrot.slane %v1844_v11, 4  ;;  %v243_v17 = vrot.slane %v1852_v15, 4  ;;  %v1858_v18 = vrot.slane %v1844_v11, %v1825_v5  ;;  %v1862_v19 = vrot.slane %v1852_v15, %v1825_v5  ;;  %v1886_v30 = vld [vmem:[%s1880_s21] sm:$0xff]  ;;  %v1889_v31 = vld [vmem:[%s1880_s21 + $0x8] sm:$0xff]  ;;  %2699 = sst [smem:[#allocation20_spill]] %s2458_s28 }
  0x1d   : > { %vm1046_vm5 = vcmp.eq.f32.partialorder %v1834_v7, 0.0  ;;  %v672_v20 = vsel %vm246_vm0, %v668_v13, 0.0  ;;  %v673_v21 = vsel %vm246_vm0, %v669_v14, 0.0  ;;  %vm1047_vm6 = vcmp.eq.f32.partialorder %v1847_v12, 0.0  ;;  %v1930_v56 = vld [vmem:[%s1921_s24] sm:$0xff]  ;;  %v1935_v60 = vld [vmem:[%s1921_s24 + $0x8] sm:$0xff] }
  0x1e   : > { %v247_v22 = vsel %vm246_vm0, %v242_v16, 0.0  ;;  %v674_v23 = vadd.f32 %v673_v21, %v672_v20  ;;  %v248_v24 = vsel %vm246_vm0, %v243_v17, 0.0  ;;  %v1871_v25 = vsel %vm1046_vm5, 1.0, %v2575_v8 }
  0x1f   : > { %2620 = vst [vmem:[#allocation8_spill] sm:$0xff] %v1871_v25  ;;  %v1874_v26 = vsel %vm1047_vm6, 1.0, %v2575_v8  ;;  %v249_v27 = vadd.f32 %v248_v24, %v247_v22  ;;  %v1073_v28 = vrot.slane %v1871_v25, 4  ;;  %vm234_vm7 = vcmp.eq.f32.partialorder %v1823_v4, 0.0 }
  0x20   : > { %2621 = vst [vmem:[#allocation9_spill] sm:$0xff] %v1874_v26  ;;  %v1074_v29 = vrot.slane %v1874_v26, 4  ;;  %675 = vadd.xlane.f32.xlu1 %v674_v23  ;;  %vm235_vm8 = vcmp.eq.f32.partialorder %v1830_v6, 0.0  ;;  %v1893_v32 = vsel %vm234_vm7, 1.0, %v2575_v8  ;;  %v283_v33 = vsub.f32 %v1886_v30, %v1823_v4 }
  0x21   : > { %v284_v34 = vsub.f32 %v1889_v31, %v1830_v6  ;;  %250 = vadd.xlane.f32.xlu0 %v249_v27  ;;  %v1077_v35 = vsel %vm246_vm0, %v1073_v28, 0.0  ;;  %v1902_v37 = vsel %vm235_vm8, 1.0, %v2575_v8  ;;  %v262_v38 = vrot.slane %v1893_v32, 4 }
  0x22   : > { %v1078_v36 = vsel %vm246_vm0, %v1074_v29, 0.0  ;;  %v263_v40 = vrot.slane %v1902_v37, 4  ;;  %v285_v41 = vmul.f32 %v283_v33, %v283_v33  ;;  %v317_v44 = vand.u32 2147483647, %v1886_v30 }
  0x23   : > { %v1079_v39 = vadd.f32 %v1078_v36, %v1077_v35  ;;  %v286_v42 = vmul.f32 %v284_v34, %v284_v34  ;;  %v266_v43 = vsel %vm246_vm0, %v262_v38, 0.0  ;;  %vm635_vm10 = vcmp.eq.f32.partialorder %v1817_v2, 1.0  ;;  %v1969_v36 = vld [vmem:[%s1921_s24 + $0x28] sm:$0xff] }
  0x24   : > { %v267_v45 = vsel %vm246_vm0, %v263_v40, 0.0  ;;  %v295_v46 = vmul.f32 %v1858_v18, %v285_v41  ;;  %vm636_vm11 = vcmp.eq.f32.partialorder %v1820_v3, 1.0  ;;  %v318_v49 = vand.u32 2147483647, %v1889_v31  ;;  %2629 = vst [vmem:[#allocation15_spill] sm:$0xff] %v1969_v36 }
  0x25   : > { %1080 = vadd.xlane.f32.xlu1 %v1079_v39  ;;  %v296_v47 = vmul.f32 %v1862_v19, %v286_v42  ;;  %v268_v48 = vadd.f32 %v267_v45, %v266_v43  ;;  %v319_v50 = vsub.f32 0.0, %v317_v44  ;;  %v1915_v51 = vsel %vm635_vm10, 1.0, %v2575_v8  ;;  %v1975_v42 = vld [vmem:[%s1880_s21 + $0x20] sm:$0xff]  ;;  %v1978_v43 = vld [vmem:[%s1880_s21 + $0x28] sm:$0xff] }
  0x26   : > { %2623 = vst [vmem:[#allocation10_spill] sm:$0xff] %v1915_v51  ;;  %v298_v52 = vsel %vm297_vm9, %v295_v46, 0.0  ;;  %v1926_v54 = vsel %vm636_vm11, 1.0, %v2575_v8  ;;  %v649_v55 = vrot.slane %v1915_v51, 4  ;;  %v464_v61 = vsub.f32 %v1930_v56, %v1823_v4 }
  0x27   : > { %v299_v53 = vsel %vm297_vm9, %v296_v47, 0.0  ;;  %2625 = vst [vmem:[#allocation11_spill] sm:$0xff] %v1926_v54  ;;  %269 = vadd.xlane.f32.xlu0 %v268_v48  ;;  %v650_v58 = vrot.slane %v1926_v54, 4  ;;  %v320_v62 = vsub.f32 0.0, %v318_v49  ;;  %v465_v0 = vsub.f32 %v1935_v60, %v1830_v6 }
  0x28   : > { %v300_v57 = vadd.f32 %v299_v53, %v298_v52  ;;  %v653_v59 = vsel %vm246_vm0, %v649_v55, 0.0  ;;  %v489_v1 = vand.u32 2147483647, %v1930_v56  ;;  %v321_v13 = vmul.f32 1.442695, %v319_v50 }
  0x29   : > { %v654_v63 = vsel %vm246_vm0, %v650_v58, 0.0  ;;  %v466_v16 = vmul.f32 %v464_v61, %v464_v61  ;;  %v467_v17 = vmul.f32 %v465_v0, %v465_v0  ;;  %v490_v20 = vand.u32 2147483647, %v1935_v60 }
  0x2a   : > { %301 = vadd.xlane.f32.xlu1 %v300_v57  ;;  %v655_v14 = vadd.f32 %v654_v63, %v653_v59  ;;  %vm1040_vm12 = vcmp.eq.f32.partialorder %v1834_v7, 1.0  ;;  %vm1041_vm13 = vcmp.eq.f32.partialorder %v1847_v12, 1.0  ;;  %v491_v22 = vsub.f32 0.0, %v489_v1  ;;  %v1957_v12 = vld [vmem:[%s1921_s24 + $0x20] sm:$0xff] }
  0x2b   : > { %v468_v21 = vmul.f32 %v466_v16, %v1858_v18  ;;  %v1948_v23 = vsel %vm1040_vm12, 1.0, %v2575_v8  ;;  %v1951_v24 = vsel %vm1041_vm13, 1.0, %v2575_v8  ;;  %v323_v27 = vmul.f32 1.442695, %v320_v62  ;;  %2628 = vst [vmem:[#allocation14_spill] sm:$0xff] %v1957_v12 }
  0x2c   : > { %656 = vadd.xlane.f32.xlu0 %v655_v14  ;;  %2626 = vst [vmem:[#allocation12_spill] sm:$0xff] %v1948_v23  ;;  %2627 = vst [vmem:[#allocation13_spill] sm:$0xff] %v1951_v24  ;;  %v469_v28 = vmul.f32 %v467_v17, %v1862_v19  ;;  %v1054_v7 = vrot.slane %v1948_v23, 4  ;;  %v1055_v29 = vrot.slane %v1951_v24, 4  ;;  %1670 = vpow2.f32 %v321_v13 }
  0x2d   : > { %v1961_v33 = vrot.slane %v1915_v51, %v1825_v5  ;;  %v1965_v34 = vrot.slane %v1926_v54, %v1825_v5  ;;  %v470_v35 = vsel %vm297_vm9, %v468_v21, 0.0  ;;  %v492_v39 = vsub.f32 0.0, %v490_v20 }
  0x2e   : > { %v471_v38 = vsel %vm297_vm9, %v469_v28, 0.0  ;;  %v1058_v40 = vsel %vm246_vm0, %v1054_v7, 0.0  ;;  %v1059_v41 = vsel %vm246_vm0, %v1055_v29, 0.0  ;;  %v493_v45 = vmul.f32 1.442695, %v491_v22 }
  0x2f   : > { %v472_v44 = vadd.f32 %v471_v38, %v470_v35  ;;  %v1060_v46 = vadd.f32 %v1059_v41, %v1058_v40  ;;  %v869_v47 = vsub.f32 %v1957_v12, %v1817_v2  ;;  %v870_v48 = vsub.f32 %v1969_v36, %v1820_v3  ;;  %v226_v29 = vld [vmem:[%s1814_s18 + $0x10] sm:$0x3]  ;;  %v463_v41 = vld [vmem:[%s1921_s24 + $0x18] sm:$0x3] }
  0x30   : > { %v894_v49 = vand.u32 2147483647, %v1957_v12  ;;  %v895_v50 = vand.u32 2147483647, %v1969_v36  ;;  %v690_v52 = vsub.f32 %v1975_v42, %v1817_v2  ;;  %v691_v55 = vsub.f32 %v1978_v43, %v1820_v3  ;;  %v462_v35 = vld [vmem:[%s1921_s24 + $0x10] sm:$0x3] }
  0x31   : > { %473 = vadd.xlane.f32.xlu1 %v472_v44  ;;  %1061 = vadd.xlane.f32.xlu0 %v1060_v46  ;;  %v871_v53 = vmul.f32 %v869_v47, %v869_v47  ;;  %v723_v57 = vand.u32 2147483647, %v1975_v42  ;;  %v724_v58 = vand.u32 2147483647, %v1978_v43  ;;  %v872_v59 = vmul.f32 %v870_v48, %v870_v48  ;;  %v227_v47 = vld [vmem:[%s1814_s18 + $0x18] sm:$0x3] }
  0x32   : > { %v896_v61 = vsub.f32 0.0, %v894_v49  ;;  %v897_v62 = vsub.f32 0.0, %v895_v50  ;;  %v692_v63 = vmul.f32 %v690_v52, %v690_v52  ;;  %v495_v0 = vmul.f32 1.442695, %v492_v39  ;;  %v281_v48 = vld [vmem:[%s1880_s21 + $0x10] sm:$0x3] }
  0x33   : > { %v873_v1 = vmul.f32 %v871_v53, %v1961_v33  ;;  %v693_v13 = vmul.f32 %v691_v55, %v691_v55  ;;  %v725_v14 = vsub.f32 0.0, %v723_v57  ;;  %v874_v16 = vmul.f32 %v872_v59, %v1965_v34 }
  0x34   : > { %v898_v17 = vmul.f32 1.442695, %v896_v61  ;;  %v702_v20 = vmul.f32 %v1961_v33, %v692_v63  ;;  %v726_v21 = vsub.f32 0.0, %v724_v58  ;;  %1672 = vpow2.f32 %v323_v27 }
  0x35   : > { %v875_v22 = vsel %vm297_vm9, %v873_v1, 0.0  ;;  %v900_v28 = vmul.f32 1.442695, %v897_v62  ;;  %v703_v7 = vmul.f32 %v1965_v34, %v693_v13  ;;  %1674 = vpow2.f32 %v493_v45  ;;  %v282_v45 = vld [vmem:[%s1880_s21 + $0x18] sm:$0x3] }
  0x36   : > { %v876_v38 = vsel %vm297_vm9, %v874_v16, 0.0  ;;  %v704_v39 = vsel %vm297_vm9, %v702_v20, 0.0  ;;  %v727_v40 = vmul.f32 1.442695, %v725_v14  ;;  %v2002_v44 = vpop.eup %1670  ;;  %1676 = vpow2.f32 %v495_v0  ;;  %v1566_v13 = vld [vmem:[%s1921_s24 + $0x30] sm:$0x3] }
  0x37   : > { %v877_v27 = vadd.f32 %v876_v38, %v875_v22  ;;  %v705_v46 = vsel %vm297_vm9, %v703_v7, 0.0  ;;  %1678 = vpow2.f32 %v898_v17  ;;  %v729_v50 = vmul.f32 1.442695, %v726_v21  ;;  %v1567_v17 = vld [vmem:[%s1921_s24 + $0x38] sm:$0x3] }
  0x38   : > { %v706_v49 = vadd.f32 %v705_v46, %v704_v39  ;;  %v580_v52 = vmax.f32 %v462_v35, 0.0  ;;  %1680 = vpow2.f32 %v900_v28  ;;  %v581_v53 = vmax.f32 %v463_v41, 0.0  ;;  %v1554_v7 = vld [vmem:[%s1814_s18 + $0x30] sm:$0x3] }
  0x39   : > { %878 = vadd.xlane.f32.xlu1 %v877_v27  ;;  %v586_v55 = vand.u32 2147483647, %v462_v35  ;;  %v587_v57 = vand.u32 2147483647, %v463_v41  ;;  %1682 = vpow2.f32 %v727_v40  ;;  %v582_v58 = vmul.f32 %v462_v35, %v226_v29  ;;  %v1555_v40 = vld [vmem:[%s1814_s18 + $0x38] sm:$0x3] }
  0x3a   : > { %707 = vadd.xlane.f32.xlu0 %v706_v49  ;;  %v583_v59 = vmul.f32 %v463_v41, %v227_v47  ;;  %v409_v61 = vmax.f32 %v281_v48, 0.0  ;;  %v411_v0 = vmul.f32 %v281_v48, %v226_v29  ;;  %v415_v1 = vand.u32 2147483647, %v281_v48  ;;  %v1562_v49 = vld [vmem:[%s1880_s21 + $0x30] sm:$0x3] }
  0x3b   : > { %v588_v62 = vsub.f32 0.0, %v586_v55  ;;  %v589_v63 = vsub.f32 0.0, %v587_v57  ;;  %1684 = vpow2.f32 %v729_v50  ;;  %v410_v14 = vmax.f32 %v282_v45, 0.0  ;;  %v1563_v55 = vld [vmem:[%s1880_s21 + $0x38] sm:$0x3] }
  0x3c   : > { %v416_v16 = vand.u32 2147483647, %v282_v45  ;;  %v412_v22 = vmul.f32 %v282_v45, %v227_v47  ;;  %v417_v28 = vsub.f32 0.0, %v415_v1  ;;  %v2011_v35 = vsub.f32 %v580_v52, %v582_v58 }
  0x3d   : > { %v590_v20 = vmul.f32 1.442695, %v588_v62  ;;  %v592_v21 = vmul.f32 1.442695, %v589_v63  ;;  %v2013_v38 = vsub.f32 %v581_v53, %v583_v59  ;;  %v991_v29 = vand.u32 2147483647, %v1566_v13 }
  0x3e   : > { %v418_v39 = vsub.f32 0.0, %v416_v16  ;;  %v2016_v41 = vpop.eup %1672  ;;  %v2018_v27 = vsub.f32 %v409_v61, %v411_v0  ;;  %v419_v46 = vmul.f32 1.442695, %v417_v28  ;;  %v992_v48 = vand.u32 2147483647, %v1567_v17 }
  0x3f   : > { %1686 = vpow2.f32 %v590_v20  ;;  %v2021_v50 = vpop.eup %1674  ;;  %v985_v52 = vmax.f32 %v1566_v13, 0.0  ;;  %v986_v45 = vmax.f32 %v1567_v17, 0.0  ;;  %v2026_v57 = vsub.f32 %v410_v14, %v412_v22 }
  0x40   : > { %1688 = vpow2.f32 %v592_v21  ;;  %v421_v47 = vmul.f32 1.442695, %v418_v39  ;;  %v2024_v53 = vpop.eup %1676  ;;  %v993_v58 = vsub.f32 0.0, %v991_v29  ;;  %v994_v59 = vsub.f32 0.0, %v992_v48 }
  0x41   : > { %1690 = vpow2.f32 %v419_v46  ;;  %v2028_v62 = vpop.eup %1678  ;;  %v987_v61 = vmul.f32 %v1566_v13, %v1554_v7  ;;  %v814_v63 = vmax.f32 %v1562_v49, 0.0  ;;  %v820_v0 = vand.u32 2147483647, %v1562_v49 }
  0x42   : > { %2630 = vst [vmem:[#allocation16_spill] sm:$0xff] %v2028_v62  ;;  %1692 = vpow2.f32 %v421_v47  ;;  %v2030_v1 = vpop.eup %1680  ;;  %v988_v16 = vmul.f32 %v1567_v17, %v1555_v40  ;;  %v995_v20 = vmul.f32 1.442695, %v993_v58  ;;  %v997_v21 = vmul.f32 1.442695, %v994_v59 }
  0x43   : > { %2631 = vst [vmem:[#allocation17_spill] sm:$0xff] %v2030_v1  ;;  %v821_v28 = vand.u32 2147483647, %v1563_v55  ;;  %v2032_v39 = vpop.eup %1682  ;;  %v815_v8 = vmax.f32 %v1563_v55, 0.0  ;;  %v816_v14 = vmul.f32 %v1562_v49, %v1554_v7  ;;  %v817_v22 = vmul.f32 %v1563_v55, %v1555_v40 }
  0x44   : > { %2632 = vst [vmem:[#allocation18_spill] sm:$0xff] %v2032_v39  ;;  %v822_v46 = vsub.f32 0.0, %v820_v0  ;;  %1694 = vpow2.f32 %v995_v20  ;;  %v311_v48 = vmax.f32 %v1886_v30, 0.0  ;;  %v313_v13 = vmul.f32 %v1886_v30, %v1823_v4 }
  0x45   : > { %v823_v29 = vsub.f32 0.0, %v821_v28  ;;  %v2037_v47 = vpop.eup %1684  ;;  %v2039_v26 = vsub.f32 %v985_v52, %v987_v61  ;;  %1696 = vpow2.f32 %v997_v21  ;;  %v325_v58 = vadd.f32 1.0, %v2002_v44 }
  0x46   : > { %2633 = vst [vmem:[#allocation19_spill] sm:$0xff] %v2037_v47  ;;  %v824_v17 = vmul.f32 1.442695, %v822_v46  ;;  %v312_v7 = vmax.f32 %v1889_v31, 0.0  ;;  %v314_v40 = vmul.f32 %v1889_v31, %v1830_v6  ;;  %v328_v49 = vmul.f32 -0.5, %v2002_v44 }
  0x47   : > { %v826_v59 = vmul.f32 1.442695, %v823_v29  ;;  %v2046_v55 = vsub.f32 %v986_v45, %v988_v16  ;;  %v2048_v0 = vsub.f32 %v814_v63, %v816_v14  ;;  %v2050_v30 = vsub.f32 %v815_v8, %v817_v22 }
  0x48   : > { %1698 = vpow2.f32 %v824_v17  ;;  %v2052_v61 = vsub.f32 %v311_v48, %v313_v13  ;;  %v329_v20 = vadd.f32 1.0, %v328_v49  ;;  %v331_v21 = vand.u32 2147483647, %v2002_v44 }
  0x49   : > { %v1687_v52 = vpop.eup %1686  ;;  %1700 = vpow2.f32 %v826_v59  ;;  %v2055_v63 = vsub.f32 %v312_v7, %v314_v40  ;;  %v2058_v8 = vadd.f32 1.0, %v2016_v41  ;;  %v2061_v13 = vmul.f32 -0.5, %v2016_v41 }
  0x4a   : > { %v1689_v28 = vpop.eup %1688  ;;  %v594_v46 = vadd.f32 1.0, %v1687_v52  ;;  %v597_v29 = vmul.f32 -0.5, %v1687_v52  ;;  %v600_v31 = vand.u32 2147483647, %v1687_v52  ;;  %1702 = vlog2.f32 %v325_v58 }
  0x4b   : > { %v1691_v25 = vpop.eup %1690  ;;  %v603_v45 = vadd.f32 1.0, %v1689_v28  ;;  %v606_v16 = vmul.f32 -0.5, %v1689_v28  ;;  %v609_v22 = vand.u32 2147483647, %v1689_v28  ;;  %v2069_v40 = vmul.f32 %v2002_v44, %v329_v20 }
  0x4c   : > { %v1693_v14 = vpop.eup %1692  ;;  %1704 = vlog2.f32 %v594_v46  ;;  %v423_v48 = vadd.f32 1.0, %v1691_v25  ;;  %v598_v17 = vadd.f32 1.0, %v597_v29  ;;  %v426_v59 = vmul.f32 -0.5, %v1691_v25 }
  0x4d   : > { %1706 = vlog2.f32 %v603_v45  ;;  %vm2064_vm14 = vcmp.lt.f32.partialorder %v600_v31, 0.0004427343  ;;  %v432_v7 = vadd.f32 1.0, %v1693_v14  ;;  %vm2071_vm15 = vcmp.lt.f32.partialorder %v331_v21, 0.0004427343 }
  0x4e   : > { %1708 = vlog2.f32 %v423_v48  ;;  %v1695_v24 = vpop.eup %1694  ;;  %v607_v23 = vadd.f32 1.0, %v606_v16  ;;  %v427_v29 = vadd.f32 1.0, %v426_v59  ;;  %v429_v45 = vand.u32 2147483647, %v1691_v25 }
  0x4f   : > { %v435_v5 = vmul.f32 -0.5, %v1693_v14  ;;  %v1697_v10 = vpop.eup %1696  ;;  %vm2075_vm1 = vcmp.lt.f32.partialorder %v609_v22, 0.0004427343  ;;  %1710 = vlog2.f32 %v432_v7  ;;  %v999_v48 = vadd.f32 1.0, %v1695_v24 }
  0x50   : > { %v1002_v58 = vmul.f32 -0.5, %v1695_v24  ;;  %v599_v54 = vmul.f32 %v1687_v52, %v598_v17  ;;  %v438_v20 = vand.u32 2147483647, %v1693_v14  ;;  %v1005_v21 = vand.u32 2147483647, %v1695_v24 }
  0x51   : > { %v436_v44 = vadd.f32 1.0, %v435_v5  ;;  %1712 = vlog2.f32 %v999_v48  ;;  %v1008_v1 = vadd.f32 1.0, %v1697_v10  ;;  %v1011_v16 = vmul.f32 -0.5, %v1697_v10 }
  0x52   : > { %v1699_v9 = vpop.eup %1698  ;;  %v1003_v51 = vadd.f32 1.0, %v1002_v58  ;;  %vm445_vm2 = vcmask 1041408   ;;  %v608_v36 = vmul.f32 %v1689_v28, %v607_v23  ;;  %v428_v62 = vmul.f32 %v1691_v25, %v427_v29 }
  0x53   : > { %v1701_v59 = vpop.eup %1700  ;;  %vm2079_vm3 = vcmp.lt.f32.partialorder %v429_v45, 0.0004427343  ;;  %v828_v7 = vadd.f32 1.0, %v1699_v9  ;;  %1714 = vlog2.f32 %v1008_v1  ;;  %v1012_v52 = vadd.f32 1.0, %v1011_v16 }
  0x54   : > { %v1703_v12 = vpop.eup %1702  ;;  %v1014_v5 = vand.u32 2147483647, %v1697_v10  ;;  %v831_v17 = vmul.f32 -0.5, %v1699_v9  ;;  %v437_v47 = vmul.f32 %v1693_v14, %v436_v44  ;;  %vm2083_vm4 = vcmp.lt.f32.partialorder %v438_v20, 0.0004427343 }
  0x55   : > { %1716 = vlog2.f32 %v828_v7  ;;  %v837_v58 = vadd.f32 1.0, %v1701_v59  ;;  %v1004_v23 = vmul.f32 %v1695_v24, %v1003_v51  ;;  %vm2087_vm5 = vcmp.lt.f32.partialorder %v1005_v21, 0.0004427343 }
  0x56   : > { %v1705_v39 = vpop.eup %1704  ;;  %v834_v28 = vand.u32 2147483647, %v1699_v9  ;;  %v840_v29 = vmul.f32 -0.5, %v1701_v59  ;;  %v832_v16 = vadd.f32 1.0, %v831_v17  ;;  %v327_v3 = vmul.f32 0.6931472, %v1703_v12 }
  0x57   : > { %v1707_v45 = vpop.eup %1706  ;;  %v596_v1 = vmul.f32 0.6931472, %v1705_v39  ;;  %1718 = vlog2.f32 %v837_v58  ;;  %v1013_v20 = vmul.f32 %v1697_v10, %v1012_v52  ;;  %vm2091_vm6 = vcmp.lt.f32.partialorder %v1014_v5, 0.0004427343 }
  0x58   : > { %v1709_v14 = vpop.eup %1708  ;;  %v605_v44 = vmul.f32 0.6931472, %v1707_v45  ;;  %v843_v7 = vand.u32 2147483647, %v1701_v59  ;;  %v333_v21 = vsel %vm2071_vm15, %v2069_v40, %v327_v3  ;;  %1720 = vlog2.f32 %v2058_v8 }
  0x59   : > { %v602_v51 = vsel %vm2064_vm14, %v599_v54, %v596_v1  ;;  %v425_v24 = vmul.f32 0.6931472, %v1709_v14  ;;  %v1711_v39 = vpop.eup %1710  ;;  %vm2104_vm7 = vcmp.lt.f32.partialorder %v834_v28, 0.0004427343  ;;  %v841_v5 = vadd.f32 1.0, %v840_v29 }
  0x5a   : > { %v611_v12 = vsel %vm2075_vm1, %v608_v36, %v605_v44  ;;  %v612_v10 = vadd.f32 %v602_v51, %v2011_v35  ;;  %v434_v46 = vmul.f32 0.6931472, %v1711_v39  ;;  %v833_v3 = vmul.f32 %v1699_v9, %v832_v16 }
  0x5b   : > { %v613_v54 = vadd.f32 %v611_v12, %v2013_v38  ;;  %v431_v49 = vsel %vm2079_vm3, %v428_v62, %v425_v24  ;;  %v1713_v40 = vpop.eup %1712  ;;  %vm2113_vm8 = vcmp.lt.f32.partialorder %v843_v7, 0.0004427343  ;;  %v343_v35 = vadd.f32 %v333_v21, %v2052_v61 }
  0x5c   : > { %v614_v8 = vmul.f32 %v612_v10, %v1858_v18  ;;  %v441_v31 = vadd.f32 %v431_v49, %v2018_v27  ;;  %v440_v38 = vsel %vm2083_vm4, %v437_v47, %v434_v46  ;;  %v1001_v22 = vmul.f32 0.6931472, %v1713_v40 }
  0x5d   : > { %v615_v17 = vmul.f32 %v613_v54, %v1862_v19  ;;  %v338_v62 = vadd.f32 1.0, %v2061_v13  ;;  %v1715_v9 = vpop.eup %1714  ;;  %v442_v28 = vadd.f32 %v440_v38, %v2026_v57  ;;  %v842_v29 = vmul.f32 %v1701_v59, %v841_v5 }
  0x5e   : > { %v616_v58 = vsel %vm445_vm2, %v614_v8, 0.0  ;;  %v443_v27 = vmul.f32 %v441_v31, %v1858_v18  ;;  %v1007_v61 = vsel %vm2087_vm5, %v1004_v23, %v1001_v22  ;;  %v1010_v16 = vmul.f32 0.6931472, %v1715_v9 }
  0x5f   : > { %v1717_v45 = vpop.eup %1716  ;;  %v617_v1 = vsel %vm445_vm2, %v615_v17, 0.0  ;;  %v345_v47 = vmul.f32 %v1844_v11, %v343_v35  ;;  %v444_v13 = vmul.f32 %v442_v28, %v1862_v19  ;;  %v1017_v44 = vadd.f32 %v1007_v61, %v2039_v26 }
  0x60   : > { %v618_v48 = vadd.f32 %v617_v1, %v616_v58  ;;  %v446_v14 = vsel %vm445_vm2, %v443_v27, 0.0  ;;  %v1016_v59 = vsel %vm2091_vm6, %v1013_v20, %v1010_v16  ;;  %v830_v7 = vmul.f32 0.6931472, %v1717_v45 }
  0x61   : > { %v1719_v57 = vpop.eup %1718  ;;  %v339_v51 = vmul.f32 %v2016_v41, %v338_v62  ;;  %v2652_v25 = vand.u32 2147483647, %v2016_v41  ;;  %vm395_vm11 = vcmask 1042432   ;;  %v447_v24 = vsel %vm445_vm2, %v444_v13, 0.0 }
  0x62   : > { %619 = vadd.xlane.f32.xlu1 %v618_v48  ;;  %v1018_v21 = vadd.f32 %v1016_v59, %v2046_v55  ;;  %v1019_v26 = vmul.f32 %v1017_v44, %v1961_v33  ;;  %v839_v39 = vmul.f32 0.6931472, %v1719_v57  ;;  %v1721_v2 = vpop.eup %1720  ;;  %v448_v20 = vadd.f32 %v447_v24, %v446_v14 }
  0x63   : > { %vm2137_vm10 = vcmp.lt.f32.partialorder %v2652_v25, 0.0004427343  ;;  %v836_v12 = vsel %vm2104_vm7, %v833_v3, %v830_v7  ;;  %v349_v10 = vrot.slane %v345_v47, 4  ;;  %v366_v41 = vmul.f32 %v1893_v32, %v343_v35 }
  0x64   : > { %v1020_v5 = vmul.f32 %v1018_v21, %v1965_v34  ;;  %v1021_v54 = vsel %vm445_vm2, %v1019_v26, 0.0  ;;  %v845_v49 = vsel %vm2113_vm8, %v842_v29, %v839_v39  ;;  %v846_v55 = vadd.f32 %v836_v12, %v2048_v0  ;;  %449 = vadd.xlane.f32.xlu0 %v448_v20  ;;  %v2655_v20 = vld [vmem:[#allocation3_spill] sm:$0xff] }
  0x65   : > { %v847_v46 = vadd.f32 %v845_v49, %v2050_v30  ;;  %v336_v40 = vmul.f32 0.6931472, %v1721_v2  ;;  %v387_v8 = vmul.f32 %v343_v35, %v1858_v18  ;;  %v483_v52 = vmax.f32 %v1930_v56, 0.0 }
  0x66   : > { %v1022_v3 = vsel %vm445_vm2, %v1020_v5, 0.0  ;;  %v848_v31 = vmul.f32 %v846_v55, %v1961_v33  ;;  %v484_v17 = vmax.f32 %v1935_v60, 0.0  ;;  %v497_v38 = vadd.f32 1.0, %v2021_v50  ;;  %v2657_v5 = vld [vmem:[#allocation18_spill] sm:$0xff] }
  0x67   : > { %v1023_v36 = vadd.f32 %v1022_v3, %v1021_v54  ;;  %v849_v22 = vmul.f32 %v847_v46, %v1965_v34  ;;  %v342_v0 = vsel %vm2137_vm10, %v339_v51, %v336_v40  ;;  %v370_v30 = vrot.slane %v366_v41, 4  ;;  %v2658_v46 = vld [vmem:[#allocation19_spill] sm:$0xff] }
  0x68   : > { %v850_v62 = vsel %vm445_vm2, %v848_v31, 0.0  ;;  %v344_v35 = vadd.f32 %v342_v0, %v2055_v63  ;;  %v353_v9 = vsel %vm246_vm0, %v349_v10, 0.0  ;;  %v391_v58 = vrot.slane %v387_v8, 5  ;;  %v2656_v10 = vld [vmem:[#allocation4_spill] sm:$0xff] }
  0x69   : > { %1024 = vadd.xlane.f32.xlu1 %v1023_v36  ;;  %v851_v28 = vsel %vm445_vm2, %v849_v22, 0.0  ;;  %v485_v27 = vmul.f32 %v1930_v56, %v1823_v4  ;;  %1722 = vlog2.f32 %v497_v38  ;;  %v500_v29 = vmul.f32 -0.5, %v2021_v50 }
  0x6a   : > { %v852_v45 = vadd.f32 %v851_v28, %v850_v62  ;;  %v346_v1 = vmul.f32 %v1852_v15, %v344_v35  ;;  %v367_v61 = vmul.f32 %v1902_v37, %v344_v35  ;;  %v388_v16 = vmul.f32 %v344_v35, %v1862_v19  ;;  %v2665_v35 = vld [vmem:[#allocation14_spill] sm:$0xff] }
  0x6b   : > { %v374_v63 = vsel %vm246_vm0, %v370_v30, 0.0  ;;  %v486_v47 = vmul.f32 %v1935_v60, %v1830_v6  ;;  %v506_v48 = vadd.f32 1.0, %v2024_v53  ;;  %v509_v13 = vmul.f32 -0.5, %v2024_v53 }
  0x6c   : > { %853 = vadd.xlane.f32.xlu0 %v852_v45  ;;  %v350_v4 = vrot.slane %v346_v1, 4  ;;  %v371_v56 = vrot.slane %v367_v61, 4  ;;  %v392_v14 = vrot.slane %v388_v16, 5  ;;  %v396_v44 = vsel %vm395_vm11, %v391_v58, 0.0  ;;  %v2669_v16 = vld [vmem:[#allocation15_spill] sm:$0xff] }
  0x6d   : > { %v487_v57 = vsub.f32 %v483_v52, %v485_v27  ;;  %v501_v59 = vadd.f32 1.0, %v500_v29  ;;  %v503_v7 = vand.u32 2147483647, %v2021_v50  ;;  %1724 = vlog2.f32 %v506_v48 }
  0x6e   : > { %v354_v51 = vsel %vm246_vm0, %v350_v4, 0.0  ;;  %v375_v25 = vsel %vm246_vm0, %v371_v56, 0.0  ;;  %v397_v6 = vsel %vm395_vm11, %v392_v14, 0.0  ;;  %v512_v60 = vand.u32 2147483647, %v2024_v53  ;;  %v2670_v56 = vld [vmem:[#allocation17_spill] sm:$0xff] }
  0x6f   : > { %v355_v23 = vadd.f32 %v354_v51, %v353_v9  ;;  %v376_v24 = vadd.f32 %v375_v25, %v374_v63  ;;  %v398_v21 = vadd.f32 %v397_v6, %v396_v44  ;;  %v510_v26 = vadd.f32 1.0, %v509_v13 }
  0x70   : > { %v717_v39 = vmax.f32 %v1975_v42, 0.0  ;;  %v718_v2 = vmax.f32 %v1978_v43, 0.0  ;;  %v719_v12 = vmul.f32 %v1975_v42, %v2655_v20  ;;  %v720_v41 = vmul.f32 %v1978_v43, %v2656_v10 }
  0x71   : > { %356 = vadd.xlane.f32.xlu1 %v355_v23  ;;  %377 = vadd.xlane.f32.xlu0 %v376_v24  ;;  %v731_v54 = vadd.f32 1.0, %v2657_v5  ;;  %v734_v49 = vmul.f32 -0.5, %v2657_v5  ;;  %v737_v55 = vand.u32 2147483647, %v2657_v5  ;;  %v740_v40 = vadd.f32 1.0, %v2658_v46 }
  0x72   : > { %v488_v8 = vsub.f32 %v484_v17, %v486_v47  ;;  %v502_v52 = vmul.f32 %v2021_v50, %v501_v59  ;;  %v743_v3 = vmul.f32 -0.5, %v2658_v46  ;;  %v746_v42 = vand.u32 2147483647, %v2658_v46 }
  0x73   : > { %v1723_v31 = vpop.eup %1722  ;;  %vm2196_vm12 = vcmp.lt.f32.partialorder %v503_v7, 0.0004427343  ;;  %vm2200_vm13 = vcmp.lt.f32.partialorder %v512_v60, 0.0004427343  ;;  %1726 = vlog2.f32 %v731_v54  ;;  %v735_v36 = vadd.f32 1.0, %v734_v49 }
  0x74   : > { %v499_v22 = vmul.f32 0.6931472, %v1723_v31  ;;  %v511_v17 = vmul.f32 %v2024_v53, %v510_v26  ;;  %v721_v0 = vsub.f32 %v717_v39, %v719_v12  ;;  %1728 = vlog2.f32 %v740_v40  ;;  %v2668_v53 = vld [vmem:[#allocation16_spill] sm:$0xff] }
  0x75   : > { %399 = vadd.xlane.f32.xlu1 %v398_v21  ;;  %v722_v50 = vsub.f32 %v718_v2, %v720_v41  ;;  %vm2205_vm14 = vcmp.lt.f32.partialorder %v737_v55, 0.0004427343  ;;  %v744_v62 = vadd.f32 1.0, %v743_v3  ;;  %v888_v9 = vmax.f32 %v2665_v35, 0.0 }
  0x76   : > { %v505_v58 = vsel %vm2196_vm12, %v502_v52, %v499_v22  ;;  %v736_v28 = vmul.f32 %v2657_v5, %v735_v36  ;;  %vm2213_vm15 = vcmp.lt.f32.partialorder %v746_v42, 0.0004427343  ;;  %v902_v29 = vadd.f32 1.0, %v2668_v53 }
  0x77   : > { %v905_v45 = vmul.f32 -0.5, %v2668_v53  ;;  %v1725_v1 = vpop.eup %1724  ;;  %v515_v61 = vadd.f32 %v505_v58, %v487_v57  ;;  %v889_v63 = vmax.f32 %v2669_v16, 0.0  ;;  %v890_v47 = vmul.f32 %v2665_v35, %v2655_v20 }
  0x78   : > { %v891_v48 = vmul.f32 %v2669_v16, %v2656_v10  ;;  %v508_v13 = vmul.f32 0.6931472, %v1725_v1  ;;  %1730 = vlog2.f32 %v902_v29  ;;  %v908_v4 = vand.u32 2147483647, %v2668_v53  ;;  %v2677_v1 = vld [vmem:[#allocation11_spill] sm:$0xff] }
  0x79   : > { %v911_v14 = vadd.f32 1.0, %v2670_v56  ;;  %v517_v44 = vmul.f32 %v1844_v11, %v515_v61  ;;  %v538_v59 = vmul.f32 %v1893_v32, %v515_v61  ;;  %v559_v57 = vmul.f32 %v515_v61, %v1858_v18  ;;  %v2678_v61 = vld [vmem:[#allocation7_spill] sm:$0xff] }
  0x7a   : > { %v906_v7 = vadd.f32 1.0, %v905_v45  ;;  %v514_v51 = vsel %vm2200_vm13, %v511_v17, %v508_v13  ;;  %v745_v25 = vmul.f32 %v2658_v46, %v744_v62  ;;  %v914_v6 = vmul.f32 -0.5, %v2670_v56 }
  0x7b   : > { %1732 = vlog2.f32 %v911_v14  ;;  %v516_v60 = vadd.f32 %v514_v51, %v488_v8  ;;  %v521_v23 = vrot.slane %v517_v44, 4  ;;  %v542_v24 = vrot.slane %v538_v59, 4 }
  0x7c   : > { %v563_v21 = vrot.slane %v559_v57, 5  ;;  %v892_v26 = vsub.f32 %v888_v9, %v890_v47  ;;  %v893_v39 = vsub.f32 %v889_v63, %v891_v48  ;;  %v915_v11 = vadd.f32 1.0, %v914_v6  ;;  %v2675_v9 = vld [vmem:[#allocation10_spill] sm:$0xff] }
  0x7d   : > { %v917_v32 = vand.u32 2147483647, %v2670_v56  ;;  %v1727_v2 = vpop.eup %1726  ;;  %v518_v18 = vmul.f32 %v1852_v15, %v516_v60  ;;  %v539_v20 = vmul.f32 %v1902_v37, %v516_v60  ;;  %v907_v12 = vmul.f32 %v2668_v53, %v906_v7 }
  0x7e   : > { %vm2237_vm1 = vcmp.lt.f32.partialorder %v908_v4, 0.0004427343  ;;  %v1729_v41 = vpop.eup %1728  ;;  %v525_v5 = vsel %vm246_vm0, %v521_v23, 0.0  ;;  %v546_v54 = vsel %vm246_vm0, %v542_v24, 0.0  ;;  %v560_v49 = vmul.f32 %v516_v60, %v1862_v19 }
  0x7f   : > { %v733_v55 = vmul.f32 0.6931472, %v1727_v2  ;;  %v522_v46 = vrot.slane %v518_v18, 4  ;;  %v543_v40 = vrot.slane %v539_v20, 4  ;;  %v567_v15 = vsel %vm395_vm11, %v563_v21, 0.0  ;;  %v2274_v2 = vld [vmem:[%s1880_s21 + $0x40] sm:$0xff] }
  0x80   : > { %v742_v8 = vmul.f32 0.6931472, %v1729_v41  ;;  %v564_v37 = vrot.slane %v560_v49, 5  ;;  %v916_v3 = vmul.f32 %v2670_v56, %v915_v11  ;;  %vm2248_vm3 = vcmp.lt.f32.partialorder %v917_v32, 0.0004427343  ;;  %v2679_v18 = vld [vmem:[#allocation5_spill] sm:$0xff] }
  0x81   : > { %v739_v52 = vsel %vm2205_vm14, %v736_v28, %v733_v55  ;;  %v526_v31 = vsel %vm246_vm0, %v522_v46, 0.0  ;;  %v547_v19 = vsel %vm246_vm0, %v543_v40, 0.0  ;;  %v2676_v28 = vld [vmem:[#allocation6_spill] sm:$0xff]  ;;  %v2680_v20 = vld [vmem:[#allocation12_spill] sm:$0xff] }
  0x82   : > { %v748_v43 = vsel %vm2213_vm15, %v745_v25, %v742_v8  ;;  %v749_v38 = vadd.f32 %v739_v52, %v721_v0  ;;  %v1731_v36 = vpop.eup %1730  ;;  %v527_v22 = vadd.f32 %v526_v31, %v525_v5  ;;  %v548_v17 = vadd.f32 %v547_v19, %v546_v54  ;;  %v2284_v54 = vld [vmem:[%s1880_s21 + $0x48] sm:$0xff] }
  0x83   : > { %v568_v30 = vsel %vm395_vm11, %v564_v37, 0.0  ;;  %v750_v62 = vadd.f32 %v748_v43, %v722_v50  ;;  %v904_v63 = vmul.f32 0.6931472, %v1731_v36  ;;  %v1129_v42 = vand.u32 2147483647, %v2284_v54 }
  0x84   : > { %v569_v35 = vadd.f32 %v568_v30, %v567_v15  ;;  %v751_v58 = vmul.f32 %v2675_v9, %v749_v38  ;;  %v772_v53 = vmul.f32 %v2676_v28, %v749_v38  ;;  %v793_v29 = vmul.f32 %v749_v38, %v1961_v33  ;;  %528 = vadd.xlane.f32.xlu0 %v527_v22  ;;  %v2302_v30 = vld [vmem:[%s1921_s24 + $0x40] sm:$0xff] }
  0x85   : > { %v1733_v45 = vpop.eup %1732  ;;  %549 = vadd.xlane.f32.xlu1 %v548_v17  ;;  %v752_v27 = vmul.f32 %v2677_v1, %v750_v62  ;;  %v773_v0 = vmul.f32 %v2678_v61, %v750_v62  ;;  %v794_v16 = vmul.f32 %v750_v62, %v1965_v34  ;;  %v910_v44 = vsel %vm2237_vm1, %v907_v12, %v904_v63  ;;  %v2305_v62 = vld [vmem:[%s1921_s24 + $0x48] sm:$0xff] }
  0x86   : > { %v755_v47 = vrot.slane %v751_v58, 4  ;;  %v776_v48 = vrot.slane %v772_v53, 4  ;;  %v797_v50 = vrot.slane %v793_v29, 5  ;;  %v913_v13 = vmul.f32 0.6931472, %v1733_v45  ;;  %v2308_v29 = vld [vmem:[%s1814_s18 + $0x40] sm:$0xff] }
  0x87   : > { %v756_v4 = vrot.slane %v752_v27, 4  ;;  %v777_v56 = vrot.slane %v773_v0, 4  ;;  %v798_v14 = vrot.slane %v794_v16, 5  ;;  %v920_v23 = vadd.f32 %v910_v44, %v892_v26  ;;  %v2681_v26 = vld [vmem:[#allocation13_spill] sm:$0xff] }
  0x88   : > { %v759_v59 = vsel %vm246_vm0, %v755_v47, 0.0  ;;  %v780_v57 = vsel %vm246_vm0, %v776_v48, 0.0  ;;  %v801_v7 = vsel %vm395_vm11, %v797_v50, 0.0  ;;  %v919_v51 = vsel %vm2248_vm3, %v916_v3, %v913_v13  ;;  %570 = vadd.xlane.f32.xlu0 %v569_v35  ;;  %v1570_v13 = vld [vmem:[%s1814_s18 + $0x50] sm:$0x3] }
  0x89   : > { %v760_v25 = vsel %vm246_vm0, %v756_v4, 0.0  ;;  %v781_v6 = vsel %vm246_vm0, %v777_v56, 0.0  ;;  %v802_v60 = vsel %vm395_vm11, %v798_v14, 0.0  ;;  %v921_v32 = vadd.f32 %v919_v51, %v893_v39  ;;  %v1578_v4 = vld [vmem:[%s1880_s21 + $0x50] sm:$0x3] }
  0x8a   : > { %v761_v24 = vadd.f32 %v760_v25, %v759_v59  ;;  %v782_v21 = vadd.f32 %v781_v6, %v780_v57  ;;  %v803_v11 = vadd.f32 %v802_v60, %v801_v7  ;;  %v2278_v12 = vrot.slane %v2680_v20, %v2679_v18  ;;  %v1579_v56 = vld [vmem:[%s1880_s21 + $0x58] sm:$0x3] }
  0x8b   : > { %v922_v10 = vmul.f32 %v2675_v9, %v920_v23  ;;  %v943_v41 = vmul.f32 %v2676_v28, %v920_v23  ;;  %v964_v5 = vmul.f32 %v920_v23, %v1961_v33  ;;  %v2288_v49 = vrot.slane %v2681_v26, %v2679_v18  ;;  %v1571_v57 = vld [vmem:[%s1814_s18 + $0x58] sm:$0x3] }
  0x8c   : > { %762 = vadd.xlane.f32.xlu1 %v761_v24  ;;  %v923_v39 = vmul.f32 %v2677_v1, %v921_v32  ;;  %v944_v55 = vmul.f32 %v2678_v61, %v921_v32  ;;  %v965_v46 = vmul.f32 %v921_v32, %v1965_v34  ;;  %783 = vadd.xlane.f32.xlu0 %v782_v21  ;;  %v1128_v33 = vand.u32 2147483647, %v2274_v2  ;;  %v2313_v1 = vld [vmem:[%s1814_s18 + $0x48] sm:$0xff] }
  0x8d   : > { %v926_v40 = vrot.slane %v922_v10, 4  ;;  %v947_v15 = vrot.slane %v943_v41, 4  ;;  %v968_v8 = vrot.slane %v964_v5, 5  ;;  %v1131_v17 = vsub.f32 0.0, %v1129_v42 }
  0x8e   : > { %v927_v37 = vrot.slane %v923_v39, 4  ;;  %v948_v52 = vrot.slane %v944_v55, 4  ;;  %v969_v3 = vrot.slane %v965_v46, 5  ;;  %v1130_v43 = vsub.f32 0.0, %v1128_v33 }
  0x8f   : > { %v930_v31 = vsel %vm246_vm0, %v926_v40, 0.0  ;;  %v951_v19 = vsel %vm246_vm0, %v947_v15, 0.0  ;;  %v972_v34 = vsel %vm395_vm11, %v968_v8, 0.0  ;;  %v1134_v53 = vmul.f32 1.442695, %v1131_v17 }
  0x90   : > { %804 = vadd.xlane.f32.xlu1 %v803_v11  ;;  %v931_v38 = vsel %vm246_vm0, %v927_v37, 0.0  ;;  %v952_v36 = vsel %vm246_vm0, %v948_v52, 0.0  ;;  %v973_v22 = vsel %vm395_vm11, %v969_v3, 0.0  ;;  %v1132_v28 = vmul.f32 1.442695, %v1130_v43 }
  0x91   : > { %v932_v35 = vadd.f32 %v931_v38, %v930_v31  ;;  %v953_v9 = vadd.f32 %v952_v36, %v951_v19  ;;  %v974_v58 = vadd.f32 %v973_v22, %v972_v34  ;;  %v1095_v45 = vsub.f32 %v2274_v2, %v2308_v29  ;;  %v1582_v37 = vld [vmem:[%s1921_s24 + $0x50] sm:$0x3]  ;;  %v1583_v52 = vld [vmem:[%s1921_s24 + $0x58] sm:$0x3] }
  0x92   : > { %v1096_v27 = vsub.f32 %v2284_v54, %v2313_v1  ;;  %v1274_v61 = vsub.f32 %v2302_v30, %v2308_v29  ;;  %1734 = vpow2.f32 %v1132_v28  ;;  %v1275_v0 = vsub.f32 %v2305_v62, %v2313_v1 }
  0x93   : > { %933 = vadd.xlane.f32.xlu0 %v932_v35  ;;  %v1299_v16 = vand.u32 2147483647, %v2302_v30  ;;  %v1300_v63 = vand.u32 2147483647, %v2305_v62  ;;  %1736 = vpow2.f32 %v1134_v53  ;;  %v1097_v47 = vmul.f32 %v1095_v45, %v1095_v45 }
  0x94   : > { %954 = vadd.xlane.f32.xlu1 %v953_v9  ;;  %v1098_v48 = vmul.f32 %v1096_v27, %v1096_v27  ;;  %v1276_v50 = vmul.f32 %v1274_v61, %v1274_v61  ;;  %v1277_v14 = vmul.f32 %v1275_v0, %v1275_v0  ;;  %v1219_v7 = vmax.f32 %v1578_v4, 0.0 }
  0x95   : > { %v1301_v44 = vsub.f32 0.0, %v1299_v16  ;;  %v1302_v59 = vsub.f32 0.0, %v1300_v63  ;;  %v1107_v51 = vmul.f32 %v2278_v12, %v1097_v47  ;;  %v1220_v60 = vmax.f32 %v1579_v56, 0.0 }
  0x96   : > { %v1108_v25 = vmul.f32 %v2288_v49, %v1098_v48  ;;  %v1278_v6 = vmul.f32 %v1276_v50, %v2278_v12  ;;  %v1279_v23 = vmul.f32 %v1277_v14, %v2288_v49  ;;  %v1221_v11 = vmul.f32 %v1578_v4, %v1570_v13 }
  0x97   : > { %975 = vadd.xlane.f32.xlu0 %v974_v58  ;;  %v1303_v24 = vmul.f32 1.442695, %v1301_v44  ;;  %v1305_v21 = vmul.f32 1.442695, %v1302_v59  ;;  %v1109_v32 = vsel %vm297_vm9, %v1107_v51, 0.0  ;;  %v1222_v41 = vmul.f32 %v1579_v56, %v1571_v57 }
  0x98   : > { %v1110_v18 = vsel %vm297_vm9, %v1108_v25, 0.0  ;;  %v1280_v10 = vsel %vm297_vm9, %v1278_v6, 0.0  ;;  %v1281_v39 = vsel %vm297_vm9, %v1279_v23, 0.0  ;;  %v2335_v55 = vsub.f32 %v1219_v7, %v1221_v11 }
  0x99   : > { %v1111_v5 = vadd.f32 %v1110_v18, %v1109_v32  ;;  %1738 = vpow2.f32 %v1303_v24  ;;  %v2337_v46 = vadd.f32 %v1281_v39, %v1280_v10  ;;  %v2339_v40 = vsub.f32 %v1220_v60, %v1222_v41 }
  0x9a   : > { %1740 = vpow2.f32 %v1305_v21  ;;  %v1225_v15 = vand.u32 2147483647, %v1578_v4  ;;  %v1226_v8 = vand.u32 2147483647, %v1579_v56  ;;  %v1390_v31 = vmax.f32 %v1582_v37, 0.0 }
  0x9b   : > { %1112 = vadd.xlane.f32.xlu0 %v1111_v5  ;;  %v1392_v19 = vmul.f32 %v1582_v37, %v1570_v13  ;;  %v1393_v34 = vmul.f32 %v1583_v52, %v1571_v57  ;;  %v1391_v22 = vmax.f32 %v1583_v52, 0.0  ;;  %v1122_v9 = vmax.f32 %v2274_v2, 0.0 }
  0x9c   : > { %v1227_v33 = vsub.f32 0.0, %v1225_v15  ;;  %v1735_v3 = vpop.eup %1734  ;;  %v1228_v42 = vsub.f32 0.0, %v1226_v8  ;;  %v1124_v58 = vmul.f32 %v2308_v29, %v2274_v2  ;;  %v1396_v61 = vand.u32 2147483647, %v1582_v37 }
  0x9d   : > { %v1737_v43 = vpop.eup %1736  ;;  %v1136_v38 = vadd.f32 1.0, %v1735_v3  ;;  %v1139_v28 = vmul.f32 -0.5, %v1735_v3  ;;  %v2346_v53 = vsub.f32 %v1390_v31, %v1392_v19  ;;  %v2348_v27 = vsub.f32 %v1391_v22, %v1393_v34 }
  0x9e   : > { %v1229_v36 = vmul.f32 1.442695, %v1227_v33  ;;  %v1145_v17 = vadd.f32 1.0, %v1737_v43  ;;  %v1231_v35 = vmul.f32 1.442695, %v1228_v42  ;;  %v1148_v45 = vmul.f32 -0.5, %v1737_v43 }
  0x9f   : > { %1742 = vlog2.f32 %v1136_v38  ;;  %v1397_v16 = vand.u32 2147483647, %v1583_v52  ;;  %v1123_v47 = vmax.f32 %v2284_v54, 0.0  ;;  %v1142_v48 = vand.u32 2147483647, %v1735_v3 }
  0xa0   : > { %1744 = vlog2.f32 %v1145_v17  ;;  %v1398_v13 = vsub.f32 0.0, %v1396_v61  ;;  %v1125_v2 = vmul.f32 %v2313_v1, %v2284_v54  ;;  %v1140_v4 = vadd.f32 1.0, %v1139_v28  ;;  %v2690_v28 = vld [vmem:[#allocation8_spill] sm:$0xff] }
  0xa1   : > { %1746 = vpow2.f32 %v1229_v36  ;;  %v1399_v14 = vsub.f32 0.0, %v1397_v16  ;;  %v1126_v44 = vsub.f32 %v1122_v9, %v1124_v58  ;;  %v1149_v59 = vadd.f32 1.0, %v1148_v45 }
  0xa2   : > { %1748 = vpow2.f32 %v1231_v35  ;;  %v1400_v7 = vmul.f32 1.442695, %v1398_v13  ;;  %v1151_v51 = vand.u32 2147483647, %v1737_v43  ;;  %v1293_v25 = vmax.f32 %v2302_v30, 0.0 }
  0xa3   : > { %v1739_v0 = vpop.eup %1738  ;;  %v1294_v6 = vmax.f32 %v2305_v62, 0.0  ;;  %v1402_v60 = vmul.f32 1.442695, %v1399_v14  ;;  %vm2355_vm9 = vcmp.lt.f32.partialorder %v1142_v48, 0.0004427343  ;;  %v1295_v54 = vmul.f32 %v2308_v29, %v2302_v30 }
  0xa4   : > { %v1741_v63 = vpop.eup %1740  ;;  %v1307_v50 = vadd.f32 1.0, %v1739_v0  ;;  %v1310_v57 = vmul.f32 -0.5, %v1739_v0  ;;  %v1296_v24 = vmul.f32 %v2313_v1, %v2305_v62  ;;  %v1141_v21 = vmul.f32 %v1735_v3, %v1140_v4 }
  0xa5   : > { %v1316_v56 = vadd.f32 1.0, %v1741_v63  ;;  %v1313_v11 = vand.u32 2147483647, %v1739_v0  ;;  %v1319_v32 = vmul.f32 -0.5, %v1741_v63  ;;  %v1150_v10 = vmul.f32 %v1737_v43, %v1149_v59 }
  0xa6   : > { %1750 = vlog2.f32 %v1307_v50  ;;  %v1311_v41 = vadd.f32 1.0, %v1310_v57  ;;  %v1322_v5 = vand.u32 2147483647, %v1741_v63  ;;  %v1127_v15 = vsub.f32 %v1123_v47, %v1125_v2 }
  0xa7   : > { %1752 = vlog2.f32 %v1316_v56  ;;  %vm2363_vm4 = vcmp.lt.f32.partialorder %v1151_v51, 0.0004427343  ;;  %v1297_v29 = vsub.f32 %v1293_v25, %v1295_v54  ;;  %v2367_v1 = vsub.f32 %v1294_v6, %v1296_v24 }
  0xa8   : > { %1754 = vpow2.f32 %v1400_v7  ;;  %vm2371_vm5 = vcmp.lt.f32.partialorder %v1313_v11, 0.0004427343  ;;  %v1320_v31 = vadd.f32 1.0, %v1319_v32  ;;  %v1312_v38 = vmul.f32 %v1739_v0, %v1311_v41  ;;  %v2691_v0 = vld [vmem:[#allocation9_spill] sm:$0xff] }
  0xa9   : > { %v1743_v18 = vpop.eup %1742  ;;  %1756 = vpow2.f32 %v1402_v60  ;;  %vm2377_vm6 = vcmp.lt.f32.partialorder %v1322_v5, 0.0004427343 }
  0xaa   : > { %v1745_v39 = vpop.eup %1744  ;;  %v1138_v8 = vmul.f32 0.6931472, %v1743_v18  ;;  %v1321_v48 = vmul.f32 %v1741_v63, %v1320_v31 }
  0xab   : > { %v1747_v30 = vpop.eup %1746  ;;  %v1147_v62 = vmul.f32 0.6931472, %v1745_v39 }
  0xac   : > { %v1749_v37 = vpop.eup %1748  ;;  %v1144_v52 = vsel %vm2355_vm9, %v1141_v21, %v1138_v8  ;;  %v1233_v3 = vadd.f32 1.0, %v1747_v30  ;;  %v1236_v17 = vmul.f32 -0.5, %v1747_v30  ;;  %v1239_v56 = vand.u32 2147483647, %v1747_v30 }
  0xad   : > { %v1153_v19 = vsel %vm2363_vm4, %v1150_v10, %v1147_v62  ;;  %v1154_v34 = vadd.f32 %v1144_v52, %v1126_v44  ;;  %v1242_v43 = vadd.f32 1.0, %v1749_v37  ;;  %v1245_v35 = vmul.f32 -0.5, %v1749_v37 }
  0xae   : > { %v1155_v22 = vadd.f32 %v1153_v19, %v1127_v15  ;;  %1758 = vlog2.f32 %v1233_v3  ;;  %v1237_v7 = vadd.f32 1.0, %v1236_v17  ;;  %v1248_v11 = vand.u32 2147483647, %v1749_v37  ;;  %v251_v17 = vpop.xlane.xlu0 %250 }
  0xaf   : > { %v1156_v9 = vmul.f32 %v2680_v20, %v1154_v34  ;;  %v1198_v58 = vmul.f32 %v1154_v34, %v2278_v12  ;;  %v1177_v45 = vmul.f32 %v2690_v28, %v1154_v34  ;;  %1760 = vlog2.f32 %v1242_v43  ;;  %v2408_v43 = vpop.xlane.xlu1 %675 }
  0xb0   : > { %v1157_v61 = vmul.f32 %v2681_v26, %v1155_v22  ;;  %v1199_v16 = vmul.f32 %v1155_v22, %v2288_v49  ;;  %v1178_v47 = vmul.f32 %v2691_v0, %v1155_v22  ;;  %v1751_v50 = vpop.eup %1750  ;;  %v1246_v23 = vadd.f32 1.0, %v1245_v35 }
  0xb1   : > { %v1160_v13 = vrot.slane %v1156_v9, 4  ;;  %v1202_v2 = vrot.slane %v1198_v58, 5  ;;  %v1181_v4 = vrot.slane %v1177_v45, 4  ;;  %v1753_v14 = vpop.eup %1752  ;;  %v1309_v41 = vmul.f32 0.6931472, %v1751_v50 }
  0xb2   : > { %v1161_v44 = vrot.slane %v1157_v61, 4  ;;  %v1203_v59 = vrot.slane %v1199_v16, 5  ;;  %v1182_v57 = vrot.slane %v1178_v47, 4  ;;  %v1755_v51 = vpop.eup %1754  ;;  %v1238_v5 = vmul.f32 %v1747_v30, %v1237_v7 }
  0xb3   : > { %v1164_v25 = vsel %vm246_vm0, %v1160_v13, 0.0  ;;  %v1206_v6 = vsel %vm395_vm11, %v1202_v2, 0.0  ;;  %v1185_v60 = vsel %vm246_vm0, %v1181_v4, 0.0  ;;  %v2390_v54 = vpop.eup %1756  ;;  %vm2395_vm7 = vcmp.lt.f32.partialorder %v1239_v56, 0.0004427343 }
  0xb4   : > { %v1165_v63 = vsel %vm246_vm0, %v1161_v44, 0.0  ;;  %v1207_v24 = vsel %vm395_vm11, %v1203_v59, 0.0  ;;  %v1186_v21 = vsel %vm246_vm0, %v1182_v57, 0.0  ;;  %v1318_v15 = vmul.f32 0.6931472, %v1753_v14  ;;  %v2429_v14 = vpop.xlane.xlu1 %1080  ;;  %v270_v57 = vpop.xlane.xlu0 %269 }
  0xb5   : > { %v1166_v32 = vadd.f32 %v1165_v63, %v1164_v25  ;;  %v1208_v18 = vadd.f32 %v1207_v24, %v1206_v6  ;;  %v1187_v10 = vadd.f32 %v1186_v21, %v1185_v60  ;;  %v1404_v8 = vadd.f32 1.0, %v1755_v51 }
  0xb6   : > { %v1247_v33 = vmul.f32 %v1749_v37, %v1246_v23  ;;  %v1315_v62 = vsel %vm2371_vm5, %v1312_v38, %v1309_v41  ;;  %v1407_v52 = vmul.f32 -0.5, %v1755_v51  ;;  %v1413_v3 = vadd.f32 1.0, %v2390_v54 }
  0xb7   : > { %1167 = vadd.xlane.f32.xlu1 %v1166_v32  ;;  %1188 = vadd.xlane.f32.xlu0 %v1187_v10  ;;  %vm2402_vm8 = vcmp.lt.f32.partialorder %v1248_v11, 0.0004427343  ;;  %v1324_v30 = vsel %vm2377_vm6, %v1321_v48, %v1318_v15  ;;  %v1325_v34 = vadd.f32 %v1315_v62, %v1297_v29  ;;  %1762 = vlog2.f32 %v1404_v8 }
  0xb8   : > { %v1759_v31 = vpop.eup %1758  ;;  %v1326_v42 = vadd.f32 %v1324_v30, %v2367_v1  ;;  %v1410_v38 = vand.u32 2147483647, %v1755_v51  ;;  %1764 = vlog2.f32 %v1413_v3  ;;  %v1416_v45 = vmul.f32 -0.5, %v2390_v54  ;;  %v302_v62 = vpop.xlane.xlu1 %301 }
  0xb9   : > { %v1761_v22 = vpop.eup %1760  ;;  %v1235_v37 = vmul.f32 0.6931472, %v1759_v31  ;;  %v1348_v9 = vmul.f32 %v2690_v28, %v1325_v34  ;;  %v1327_v58 = vmul.f32 %v2680_v20, %v1325_v34  ;;  %v1408_v16 = vadd.f32 1.0, %v1407_v52 }
  0xba   : > { %v1244_v35 = vmul.f32 0.6931472, %v1761_v22  ;;  %v1349_v36 = vmul.f32 %v2691_v0, %v1326_v42  ;;  %v1328_v61 = vmul.f32 %v2681_v26, %v1326_v42  ;;  %v1419_v2 = vand.u32 2147483647, %v2390_v54 }
  0xbb   : > { %1209 = vadd.xlane.f32.xlu1 %v1208_v18  ;;  %v1241_v29 = vsel %vm2395_vm7, %v1238_v5, %v1235_v37  ;;  %v1352_v48 = vrot.slane %v1348_v9, 4  ;;  %v1331_v28 = vrot.slane %v1327_v58, 4  ;;  %vm2425_vm10 = vcmp.lt.f32.partialorder %v1410_v38, 0.0004427343 }
  0xbc   : > { %v1250_v1 = vsel %vm2402_vm8, %v1247_v33, %v1244_v35  ;;  %v1251_v47 = vadd.f32 %v1241_v29, %v2335_v55  ;;  %v1353_v50 = vrot.slane %v1349_v36, 4  ;;  %v1332_v13 = vrot.slane %v1328_v61, 4 }
  0xbd   : > { %v1252_v20 = vadd.f32 %v1250_v1, %v2339_v40  ;;  %v1356_v0 = vsel %vm246_vm0, %v1352_v48, 0.0  ;;  %v1417_v56 = vadd.f32 1.0, %v1416_v45  ;;  %v1409_v44 = vmul.f32 %v1755_v51, %v1408_v16 }
  0xbe   : > { %v1253_v4 = vmul.f32 %v1251_v47, %v2278_v12  ;;  %v1357_v40 = vsel %vm246_vm0, %v1353_v50, 0.0  ;;  %v1369_v59 = vmul.f32 %v1325_v34, %v2278_v12  ;;  %v1335_v6 = vsel %vm246_vm0, %v1331_v28, 0.0  ;;  %v657_v47 = vpop.xlane.xlu0 %656  ;;  %v474_v48 = vpop.xlane.xlu1 %473 }
  0xbf   : > { %1283 = vadd.xlane.f32.xlu1 %v2337_v46  ;;  %v1254_v55 = vmul.f32 %v1252_v20, %v2288_v49  ;;  %v1358_v25 = vadd.f32 %v1357_v40, %v1356_v0  ;;  %v1370_v60 = vmul.f32 %v1326_v42, %v2288_v49  ;;  %v1336_v63 = vsel %vm246_vm0, %v1332_v13, 0.0 }
  0xc0   : > { %v1255_v7 = vsel %vm445_vm2, %v1253_v4, 0.0  ;;  %v1373_v46 = vrot.slane %v1369_v59, 5  ;;  %v252_v24 = vrot.slane %v251_v17, 4  ;;  %v1418_v51 = vmul.f32 %v2390_v54, %v1417_v56 }
  0xc1   : > { %v1256_v23 = vsel %vm445_vm2, %v1254_v55, 0.0  ;;  %v1763_v21 = vpop.eup %1762  ;;  %v1374_v32 = vrot.slane %v1370_v60, 5  ;;  %v271_v18 = vrot.slane %v270_v57, 4  ;;  %vm1420_vm12 = vcmp.lt.f32.partialorder %v1419_v2, 0.0004427343 }
  0xc2   : > { %v1257_v11 = vadd.f32 %v1256_v23, %v1255_v7  ;;  %v1765_v10 = vpop.eup %1764  ;;  %v1406_v41 = vmul.f32 0.6931472, %v1763_v21  ;;  %v1377_v5 = vsel %vm395_vm11, %v1373_v46, 0.0  ;;  %v253_v39 = vadd.f32 %v252_v24, %v251_v17  ;;  %v2452_v28 = vpop.xlane.xlu0 %1061 }
  0xc3   : > { %1359 = vadd.xlane.f32.xlu1 %v1358_v25  ;;  %v1337_v15 = vadd.f32 %v1336_v63, %v1335_v6  ;;  %v1415_v8 = vmul.f32 0.6931472, %v1765_v10  ;;  %v1378_v33 = vsel %vm395_vm11, %v1374_v32, 0.0  ;;  %v272_v31 = vadd.f32 %v271_v18, %v270_v57 }
  0xc4   : > { %1258 = vadd.xlane.f32.xlu0 %v1257_v11  ;;  %v1412_v52 = vsel %vm2425_vm10, %v1409_v44, %v1406_v41  ;;  %v1379_v3 = vadd.f32 %v1378_v33, %v1377_v5  ;;  %v254_v54 = vrot.slane %v253_v39, 2  ;;  %v303_v22 = vrot.slane %v302_v62, 4 }
  0xc5   : > { %v1421_v19 = vsel %vm1420_vm12, %v1418_v51, %v1415_v8  ;;  %v1422_v30 = vadd.f32 %v1412_v52, %v2346_v53  ;;  %v273_v17 = vrot.slane %v272_v31, 2  ;;  %v2700_v50 = vmov 0.0  }
  0xc6   : > { %v1423_v34 = vadd.f32 %v1421_v19, %v2348_v27  ;;  %v255_v42 = vadd.f32 %v254_v54, %v253_v39  ;;  %v304_v35 = vadd.f32 %v303_v22, %v302_v62  ;;  %v2460_v20 = vpop.xlane.xlu1 %878  ;;  %1458 = vst [vmem:[%s2458_s28 + $0x6] sm:$0x3] %v2700_v50  ;;  %v475_v55 = vrot.slane %v474_v48, 4 }
  0xc7   : > { %v1424_v37 = vmul.f32 %v1422_v30, %v2278_v12  ;;  %v274_v27 = vadd.f32 %v273_v17, %v272_v31  ;;  %v708_v13 = vpop.xlane.xlu0 %707  ;;  %v677_v19 = vrot.slane %v2408_v43, 4 }
  0xc8   : > { %1338 = vadd.xlane.f32.xlu0 %v1337_v15  ;;  %v1425_v38 = vmul.f32 %v1423_v34, %v2288_v49  ;;  %v256_v58 = vrot.slane %v255_v42, 1  ;;  %v305_v29 = vrot.slane %v304_v35, 2  ;;  %v476_v57 = vadd.f32 %v475_v55, %v474_v48 }
  0xc9   : > { %v1426_v9 = vsel %vm445_vm2, %v1424_v37, 0.0  ;;  %v275_v12 = vrot.slane %v274_v27, 1  ;;  %v709_v30 = vrot.slane %v708_v13, 4 }
  0xca   : > { %v1427_v45 = vsel %vm445_vm2, %v1425_v38, 0.0  ;;  %v257_v53 = vadd.f32 %v256_v58, %v255_v42  ;;  %v306_v61 = vadd.f32 %v305_v29, %v304_v35  ;;  %v477_v46 = vrot.slane %v476_v57, 2 }
  0xcb   : > { %v1428_v36 = vadd.f32 %v1427_v45, %v1426_v9  ;;  %v276_v49 = vadd.f32 %v275_v12, %v274_v27  ;;  %v1063_v38 = vrot.slane %v2452_v28, 4  ;;  %v880_v35 = vrot.slane %v2460_v20, 4 }
  0xcc   : > { %1380 = vadd.xlane.f32.xlu0 %v1379_v3  ;;  %1589 = vpush %v257_v53  ;;  %v307_v16 = vrot.slane %v306_v61, 1  ;;  %v478_v15 = vadd.f32 %v477_v46, %v476_v57  ;;  %v658_v3 = vrot.slane %v657_v47, 4  ;;  %v678_v9 = vadd.f32 %v677_v19, %v2408_v43 }
  0xcd   : > { %1429 = vadd.xlane.f32.xlu1 %v1428_v36  ;;  %1591 = vpush %v276_v49  ;;  %v710_v58 = vadd.f32 %v709_v30, %v708_v13 }
  0xce   : > { %v308_v1 = vadd.f32 %v307_v16, %v306_v61  ;;  %v479_v31 = vrot.slane %v478_v15, 1  ;;  %v659_v42 = vadd.f32 %v658_v3, %v657_v47  ;;  %v1082_v61 = vrot.slane %v2429_v14, 4 }
  0xcf   : > { %v2474_v16 = vadd.f32 %v1063_v38, %v2452_v28  ;;  %v679_v43 = vrot.slane %v678_v9, 2  ;;  %v711_v50 = vrot.slane %v710_v58, 2 }
  0xd0   : > { %1593 = vpush %v308_v1  ;;  %v480_v17 = vadd.f32 %v479_v31, %v478_v15  ;;  %v660_v12 = vrot.slane %v659_v42, 2  ;;  %v881_v1 = vadd.f32 %v880_v35, %v2460_v20 }
  0xd1   : > { %v680_v46 = vadd.f32 %v679_v43, %v678_v9 }
  0xd2   : > { %v882_v57 = vrot.slane %v881_v1, 2 }
  0xd3   : > { %v681_v19 = vrot.slane %v680_v46, 1 }
  0xd4   : > { %v883_v3 = vadd.f32 %v882_v57, %v881_v1 }
  0xd6   : > { %v884_v57 = vrot.slane %v883_v3, 1 }
  0xef   : > { %v620_v2 = vpop.xlane.xlu1 %619 }
  0xf0   : > { %v621_v34 = vrot.slane %v620_v2, 4 }
  0xf1   : > { %v450_v4 = vpop.xlane.xlu0 %449 }
  0xf2   : > { %v451_v56 = vrot.slane %v450_v4, 4  ;;  %v622_v45 = vadd.f32 %v621_v34, %v620_v2 }
  0xf4   : > { %v452_v40 = vadd.f32 %v451_v56, %v450_v4  ;;  %v623_v13 = vrot.slane %v622_v45, 2 }
  0xf6   : > { %v2464_v0 = vpop.xlane.xlu1 %1024  ;;  %v453_v23 = vrot.slane %v452_v40, 2 }
  0xf8   : > { %v454_v10 = vadd.f32 %v453_v23, %v452_v40  ;;  %v2479_v40 = vadd.f32 %v1082_v61, %v2429_v14 }
  0xf9   : > { %v2466_v26 = vpop.xlane.xlu0 %853 }
  0xfa   : > { %v455_v52 = vrot.slane %v454_v10, 1  ;;  %v855_v49 = vrot.slane %v2466_v26, 4 }
  0xfc   : > { %v456_v37 = vadd.f32 %v455_v52, %v454_v10  ;;  %v856_v28 = vadd.f32 %v855_v49, %v2466_v26 }
  0xfd   : > { %s2490_s29 = spop %1589 }
  0xfe   : > { %v357_v44 = vpop.xlane.xlu1 %356  ;;  %v378_v59 = vpop.xlane.xlu0 %377  ;;  %s2492_s30 = spop %1591 }
  0xff   : > { %v358_v7 = vrot.slane %v357_v44, 4  ;;  %v379_v25 = vrot.slane %v378_v59, 4 }
 0x101   : > { %v359_v6 = vadd.f32 %v358_v7, %v357_v44  ;;  %v380_v60 = vadd.f32 %v379_v25, %v378_v59  ;;  %v1065_v44 = vrot.slane %v2474_v16, 2  ;;  %v661_v59 = vadd.f32 %v660_v12, %v659_v42  ;;  %s2494_s4 = spop %1593 }
 0x102   : > { %v400_v63 = vpop.xlane.xlu1 %399  ;;  %v682_v12 = vadd.f32 %v681_v19, %v680_v46 }
 0x103   : > { %v360_v24 = vrot.slane %v359_v6, 2  ;;  %v381_v21 = vrot.slane %v380_v60, 2  ;;  %v401_v11 = vrot.slane %v400_v63, 4  ;;  %v662_v26 = vrot.slane %v661_v59, 1 }
 0x105   : > { %v402_v51 = vadd.f32 %v401_v11, %v400_v63  ;;  %v361_v32 = vadd.f32 %v360_v24, %v359_v6  ;;  %v382_v18 = vadd.f32 %v381_v21, %v380_v60  ;;  %v624_v63 = vadd.f32 %v623_v13, %v622_v45 }
 0x106   : > { %v712_v24 = vadd.f32 %v711_v50, %v710_v58  ;;  %v663_v42 = vadd.f32 %v662_v26, %v661_v59 }
 0x107   : > { %v403_v41 = vrot.slane %v402_v51, 2  ;;  %v362_v5 = vrot.slane %v361_v32, 1  ;;  %v383_v39 = vrot.slane %v382_v18, 1  ;;  %v625_v52 = vrot.slane %v624_v63, 1 }
 0x108   : > { %v713_v30 = vrot.slane %v712_v24, 1 }
 0x109   : > { %v363_v8 = vadd.f32 %v362_v5, %v361_v32  ;;  %v384_v33 = vadd.f32 %v383_v39, %v382_v18  ;;  %v404_v62 = vadd.f32 %v403_v41, %v402_v51  ;;  %v1026_v32 = vrot.slane %v2464_v0, 4 }
 0x10a   : > { %v857_v18 = vrot.slane %v856_v28, 2  ;;  %v714_v49 = vadd.f32 %v713_v30, %v712_v24 }
 0x10b   : > { %1595 = vpush %v363_v8  ;;  %v405_v54 = vrot.slane %v404_v62, 1  ;;  %v1027_v34 = vadd.f32 %v1026_v32, %v2464_v0 }
 0x10c   : > { %1597 = vpush %v384_v33  ;;  %v858_v45 = vadd.f32 %v857_v18, %v856_v28 }
 0x10d   : > { %v406_v22 = vadd.f32 %v405_v54, %v404_v62  ;;  %v1028_v0 = vrot.slane %v1027_v34, 2 }
 0x10f   : > { %1599 = vpush %v406_v22 }
 0x110   : > { %1601 = vpush %v456_v37 }
 0x111   : > { %v529_v29 = vpop.xlane.xlu0 %528  ;;  %1603 = vpush %v480_v17 }
 0x112   : > { %v550_v36 = vpop.xlane.xlu1 %549  ;;  %v530_v53 = vrot.slane %v529_v29, 4 }
 0x113   : > { %v551_v27 = vrot.slane %v550_v36, 4 }
 0x114   : > { %v531_v47 = vadd.f32 %v530_v53, %v529_v29  ;;  %v626_v53 = vadd.f32 %v625_v52, %v624_v63  ;;  %v1066_v63 = vadd.f32 %v1065_v44, %v2474_v16 }
 0x115   : > { %v552_v48 = vadd.f32 %v551_v27, %v550_v36  ;;  %v571_v2 = vpop.xlane.xlu0 %570 }
 0x116   : > { %v532_v4 = vrot.slane %v531_v47, 2  ;;  %v572_v55 = vrot.slane %v571_v2, 4  ;;  %v1067_v44 = vrot.slane %v1066_v63, 1 }
 0x117   : > { %v553_v56 = vrot.slane %v552_v48, 2 }
 0x118   : > { %v573_v7 = vadd.f32 %v572_v55, %v571_v2  ;;  %v533_v25 = vadd.f32 %v532_v4, %v531_v47  ;;  %v1084_v55 = vrot.slane %v2479_v40, 2  ;;  %v1068_v52 = vadd.f32 %v1067_v44, %v1066_v63 }
 0x119   : > { %v763_v20 = vpop.xlane.xlu1 %762  ;;  %v554_v6 = vadd.f32 %v553_v56, %v552_v48  ;;  %v784_v23 = vpop.xlane.xlu0 %783  ;;  %v859_v56 = vrot.slane %v858_v45, 1 }
 0x11a   : > { %v764_v60 = vrot.slane %v763_v20, 4  ;;  %v574_v21 = vrot.slane %v573_v7, 2  ;;  %v785_v11 = vrot.slane %v784_v23, 4  ;;  %v534_v51 = vrot.slane %v533_v25, 1 }
 0x11b   : > { %v555_v14 = vrot.slane %v554_v6, 1  ;;  %v1085_v32 = vadd.f32 %v1084_v55, %v2479_v40 }
 0x11c   : > { %v765_v10 = vadd.f32 %v764_v60, %v763_v20  ;;  %v786_v41 = vadd.f32 %v785_v11, %v784_v23  ;;  %v535_v39 = vadd.f32 %v534_v51, %v533_v25  ;;  %v575_v8 = vadd.f32 %v574_v21, %v573_v7 }
 0x11d   : > { %v805_v5 = vpop.xlane.xlu1 %804  ;;  %v556_v15 = vadd.f32 %v555_v14, %v554_v6  ;;  %v1029_v23 = vadd.f32 %v1028_v0, %v1027_v34  ;;  %v860_v21 = vadd.f32 %v859_v56, %v858_v45  ;;  %v885_v51 = vadd.f32 %v884_v57, %v883_v3 }
 0x11e   : > { %v766_v33 = vrot.slane %v765_v10, 2  ;;  %v806_v62 = vrot.slane %v805_v5, 4  ;;  %v787_v54 = vrot.slane %v786_v41, 2  ;;  %1605 = vpush %v535_v39  ;;  %v576_v31 = vrot.slane %v575_v8, 1 }
 0x11f   : > { %1607 = vpush %v556_v15  ;;  %v1086_v15 = vrot.slane %v1085_v32, 1 }
 0x120   : > { %v807_v22 = vadd.f32 %v806_v62, %v805_v5  ;;  %v934_v37 = vpop.xlane.xlu0 %933  ;;  %v767_v38 = vadd.f32 %v766_v33, %v765_v10  ;;  %v577_v9 = vadd.f32 %v576_v31, %v575_v8  ;;  %v788_v58 = vadd.f32 %v787_v54, %v786_v41 }
 0x121   : > { %v935_v17 = vrot.slane %v934_v37, 4  ;;  %v955_v35 = vpop.xlane.xlu1 %954  ;;  %v1030_v5 = vrot.slane %v1029_v23, 1  ;;  %v1087_v40 = vadd.f32 %v1086_v15, %v1085_v32 }
 0x122   : > { %v808_v29 = vrot.slane %v807_v22, 2  ;;  %v956_v36 = vrot.slane %v955_v35, 4  ;;  %v768_v27 = vrot.slane %v767_v38, 1  ;;  %1609 = vpush %v577_v9  ;;  %v789_v1 = vrot.slane %v788_v58, 1 }
 0x123   : > { %v936_v61 = vadd.f32 %v935_v17, %v934_v37  ;;  %1611 = vpush %v626_v53  ;;  %v1031_v62 = vadd.f32 %v1030_v5, %v1029_v23 }
 0x124   : > { %v957_v47 = vadd.f32 %v956_v36, %v955_v35  ;;  %v976_v48 = vpop.xlane.xlu0 %975  ;;  %v769_v43 = vadd.f32 %v768_v27, %v767_v38  ;;  %v809_v50 = vadd.f32 %v808_v29, %v807_v22  ;;  %1613 = vpush %v663_v42  ;;  %v790_v4 = vadd.f32 %v789_v1, %v788_v58 }
 0x125   : > { %v937_v13 = vrot.slane %v936_v61, 2  ;;  %v977_v2 = vrot.slane %v976_v48, 4  ;;  %1615 = vpush %v682_v12 }
 0x126   : > { %v958_v28 = vrot.slane %v957_v47, 2  ;;  %v810_v59 = vrot.slane %v809_v50, 1  ;;  %1617 = vpush %v714_v49 }
 0x127   : > { %v978_v7 = vadd.f32 %v977_v2, %v976_v48  ;;  %v938_v20 = vadd.f32 %v937_v13, %v936_v61  ;;  %1619 = vpush %v769_v43 }
 0x128   : > { %v1113_v25 = vpop.xlane.xlu0 %1112  ;;  %v811_v6 = vadd.f32 %v810_v59, %v809_v50  ;;  %v959_v60 = vadd.f32 %v958_v28, %v957_v47  ;;  %1621 = vpush %v790_v4 }
 0x129   : > { %v979_v46 = vrot.slane %v978_v7, 2  ;;  %v1114_v24 = vrot.slane %v1113_v25, 4  ;;  %v939_v11 = vrot.slane %v938_v20, 1 }
 0x12a   : > { %1623 = vpush %v811_v6  ;;  %v960_v14 = vrot.slane %v959_v60, 1 }
 0x12b   : > { %v1115_v18 = vadd.f32 %v1114_v24, %v1113_v25  ;;  %1625 = vpush %v860_v21  ;;  %v940_v10 = vadd.f32 %v939_v11, %v938_v20  ;;  %v980_v26 = vadd.f32 %v979_v46, %v978_v7 }
 0x12c   : > { %1627 = vpush %v885_v51  ;;  %v961_v41 = vadd.f32 %v960_v14, %v959_v60 }
 0x12d   : > { %v1116_v39 = vrot.slane %v1115_v18, 2  ;;  %1629 = vpush %v940_v10  ;;  %v981_v16 = vrot.slane %v980_v26, 1 }
 0x12e   : > { %1631 = vpush %v961_v41 }
 0x12f   : > { %v982_v8 = vadd.f32 %v981_v16, %v980_v26  ;;  %v1117_v33 = vadd.f32 %v1116_v39, %v1115_v18 }
 0x131   : > { %1633 = vpush %v982_v8  ;;  %v1118_v3 = vrot.slane %v1117_v33, 1 }
 0x132   : > { %1635 = vpush %v1031_v62 }
 0x133   : > { %1637 = vpush %v1068_v52  ;;  %v1119_v54 = vadd.f32 %v1118_v3, %v1117_v33 }
 0x134   : > { %1639 = vpush %v1087_v40 }
 0x135   : > { %1641 = vpush %v1119_v54 }
 0x13c   : > { %s2496_s5 = spop %1595 }
 0x13d   : > { %s2498_s6 = spop %1597 }
 0x140   : > { %s2500_s7 = spop %1599 }
 0x141   : > { %s2502_s8 = spop %1601 }
 0x142   : > { %s2504_s9 = spop %1603 }
 0x144   : > { %v1168_v31 = vpop.xlane.xlu1 %1167  ;;  %v1189_v19 = vpop.xlane.xlu0 %1188 }
 0x145   : > { %v1169_v30 = vrot.slane %v1168_v31, 4  ;;  %v1190_v34 = vrot.slane %v1189_v19, 4 }
 0x147   : > { %v1170_v22 = vadd.f32 %v1169_v30, %v1168_v31  ;;  %v1191_v37 = vadd.f32 %v1190_v34, %v1189_v19 }
 0x148   : > { %v1210_v42 = vpop.xlane.xlu1 %1209 }
 0x149   : > { %v1171_v38 = vrot.slane %v1170_v22, 2  ;;  %v1211_v17 = vrot.slane %v1210_v42, 4  ;;  %v1192_v35 = vrot.slane %v1191_v37, 2 }
 0x14b   : > { %v1212_v9 = vadd.f32 %v1211_v17, %v1210_v42  ;;  %v1172_v58 = vadd.f32 %v1171_v38, %v1170_v22  ;;  %v1193_v45 = vadd.f32 %v1192_v35, %v1191_v37 }
 0x14c   : > { %v1284_v29 = vpop.xlane.xlu1 %1283 }
 0x14d   : > { %v1213_v36 = vrot.slane %v1212_v9, 2  ;;  %v1285_v53 = vrot.slane %v1284_v29, 4  ;;  %v1173_v27 = vrot.slane %v1172_v58, 1  ;;  %v1194_v61 = vrot.slane %v1193_v45, 1 }
 0x14f   : > { %v1286_v12 = vadd.f32 %v1285_v53, %v1284_v29  ;;  %v1174_v49 = vadd.f32 %v1173_v27, %v1172_v58  ;;  %v1195_v1 = vadd.f32 %v1194_v61, %v1193_v45  ;;  %v1214_v0 = vadd.f32 %v1213_v36, %v1212_v9  ;;  %s2506_s10 = spop %1605 }
 0x150   : > { %v1360_v47 = vpop.xlane.xlu1 %1359  ;;  %s2508_s11 = spop %1607 }
 0x151   : > { %v1287_v48 = vrot.slane %v1286_v12, 2  ;;  %v1259_v43 = vpop.xlane.xlu0 %1258  ;;  %v1361_v50 = vrot.slane %v1360_v47, 4  ;;  %1643 = vpush %v1174_v49  ;;  %v1215_v13 = vrot.slane %v1214_v0, 1  ;;  %s558_s3 = sadd.f32 %s2508_s11, %s2498_s6 }
 0x152   : > { %v1260_v2 = vrot.slane %v1259_v43, 4  ;;  %1645 = vpush %v1195_v1 }
 0x153   : > { %v1362_v4 = vadd.f32 %v1361_v50, %v1360_v47  ;;  %v1216_v56 = vadd.f32 %v1215_v13, %v1214_v0  ;;  %v1288_v55 = vadd.f32 %v1287_v48, %v1286_v12  ;;  %s2510_s13 = spop %1609 }
 0x154   : > { %v1261_v28 = vadd.f32 %v1260_v2, %v1259_v43  ;;  %s2512_s14 = spop %1611 }
 0x155   : > { %v1363_v59 = vrot.slane %v1362_v4, 2  ;;  %v1339_v57 = vpop.xlane.xlu0 %1338  ;;  %1647 = vpush %v1216_v56  ;;  %s2514_s15 = spop %1613  ;;  %v1289_v25 = vrot.slane %v1288_v55, 1 }
 0x156   : > { %v1262_v7 = vrot.slane %v1261_v28, 2  ;;  %v1340_v20 = vrot.slane %v1339_v57, 4  ;;  %s2516_s16 = spop %1615  ;;  %s665_s26 = sadd.f32 %s2514_s15, %s2490_s29 }
 0x157   : > { %v1364_v6 = vadd.f32 %v1363_v59, %v1362_v4  ;;  %s2518_s17 = spop %1617  ;;  %v1290_v51 = vadd.f32 %v1289_v25, %v1288_v55  ;;  %s684_s0 = sadd.f32 %s2516_s16, %s2492_s30 }
 0x158   : > { %v1341_v60 = vadd.f32 %v1340_v20, %v1339_v57  ;;  %v1263_v23 = vadd.f32 %v1262_v7, %v1261_v28  ;;  %s2520_s18 = spop %1619  ;;  %s458_s15 = sadd.f32 %s2502_s8, %s2500_s7 }
 0x159   : > { %v1381_v63 = vpop.xlane.xlu0 %1380  ;;  %s2522_s19 = spop %1621  ;;  %v1365_v14 = vrot.slane %v1364_v6, 1  ;;  %s628_s16 = sadd.f32 %s2512_s14, %s2510_s13 }
 0x15a   : > { %v1342_v46 = vrot.slane %v1341_v60, 2  ;;  %v1382_v24 = vrot.slane %v1381_v63, 4  ;;  %v1264_v21 = vrot.slane %v1263_v23, 1  ;;  %v1430_v11 = vpop.xlane.xlu1 %1429  ;;  %s2701_s13 = sld [smem:[#allocation20_spill]] }
 0x15b   : > { %s2524_s20 = spop %1623  ;;  %v1431_v32 = vrot.slane %v1430_v11, 4  ;;  %v1366_v16 = vadd.f32 %v1365_v14, %v1364_v6  ;;  %s629_s12 = sadd.f32 %s628_s16, %s458_s15 }
 0x15c   : > { %s2526_s21 = spop %1625  ;;  %v1383_v18 = vadd.f32 %v1382_v24, %v1381_v63  ;;  %v1265_v10 = vadd.f32 %v1264_v21, %v1263_v23  ;;  %v1343_v26 = vadd.f32 %v1342_v46, %v1341_v60 }
 0x15d   : > { %s2528_s22 = spop %1627  ;;  %v1432_v41 = vadd.f32 %v1431_v32, %v1430_v11 }
 0x15e   : > { %v1384_v5 = vrot.slane %v1383_v18, 2  ;;  %1649 = vpush %v1265_v10  ;;  %v1344_v39 = vrot.slane %v1343_v26, 1  ;;  %s2530_s23 = spop %1629 }
 0x15f   : > { %1651 = vpush %v1290_v51  ;;  %s2532_s24 = spop %1631  ;;  %v1433_v44 = vrot.slane %v1432_v41, 2 }
 0x160   : > { %v1385_v15 = vadd.f32 %v1384_v5, %v1383_v18  ;;  %v1345_v8 = vadd.f32 %v1344_v39, %v1343_v26 }
 0x161   : > { %v1434_v33 = vadd.f32 %v1433_v44, %v1432_v41 }
 0x162   : > { %s2534_s25 = spop %1633  ;;  %1653 = vpush %v1345_v8  ;;  %v1386_v62 = vrot.slane %v1385_v15, 1 }
 0x163   : > { %s2538_s27 = spop %1635  ;;  %1655 = vpush %v1366_v16  ;;  %v1435_v3 = vrot.slane %v1434_v33, 1 }
 0x164   : > { %s1638_s1 = spop %1637  ;;  %v1387_v52 = vadd.f32 %v1386_v62, %v1385_v15 }
 0x165   : > { %s1070_s2 = sadd.f32 %s1638_s1, %s665_s26  ;;  %s1640_s29 = spop %1639  ;;  %v1436_v40 = vadd.f32 %v1435_v3, %v1434_v33 }
 0x166   : > { %1657 = vpush %v1387_v52  ;;  %s1089_s30 = sadd.f32 %s1640_s29, %s684_s0 }
 0x167   : > { %v1452_v54 = vstv %s1070_s2  ;;  %1659 = vpush %v1436_v40  ;;  %s482_s1 = sadd.f32 %s2504_s9, %s2494_s4 }
 0x168   : > { %1454 = vst [vmem:[%s2458_s28 + $0x4] sm:$0x1] %v1452_v54  ;;  %v1455_v31 = vstv %s1089_s30  ;;  %s537_s26 = sadd.f32 %s2506_s10, %s2496_s5 }
 0x169   : > { %1457 = vst [vmem:[%s2458_s28 + $0x5] sm:$0x1] %v1455_v31  ;;  %s716_s2 = sadd.f32 %s2518_s17, %s482_s1  ;;  %s1642_s28 = spop %1641 }
 0x16a   : > { %s862_s0 = sadd.f32 %s2526_s21, %s2524_s20 }
 0x16b   : > { %s771_s29 = sadd.f32 %s2520_s18, %s537_s26 }
 0x16c   : > { %s792_s30 = sadd.f32 %s2522_s19, %s558_s3 }
 0x16d   : > { %s887_s7 = sadd.f32 %s2528_s22, %s716_s2 }
 0x16e   : > { %s863_s8 = sadd.f32 %s862_s0, %s629_s12 }
 0x16f   : > { %s942_s4 = sadd.f32 %s2530_s23, %s771_s29 }
 0x170   : > { %s963_s5 = sadd.f32 %s2532_s24, %s792_s30 }
 0x171   : > { %s1033_s10 = sadd.f32 %s2538_s27, %s2534_s25 }
 0x172   : > { %s1121_s11 = sadd.f32 %s1642_s28, %s887_s7 }
 0x173   : > { %s1034_s22 = sadd.f32 %s1033_s10, %s863_s8 }
 0x182   : > { %s1644_s14 = spop %1643 }
 0x183   : > { %s1646_s9 = spop %1645  ;;  %s1176_s16 = sadd.f32 %s1644_s14, %s942_s4 }
 0x184   : > { %s1197_s20 = sadd.f32 %s1646_s9, %s963_s5 }
 0x186   : > { %s1648_s6 = spop %1647 }
 0x18f   : > { %s1650_s15 = spop %1649 }
 0x190   : > { %s1652_s1 = spop %1651  ;;  %s1267_s18 = sadd.f32 %s1650_s15, %s1648_s6 }
 0x191   : > { %s1292_s17 = sadd.f32 %s1652_s1, %s1121_s11 }
 0x192   : > { %s1268_s28 = sadd.f32 %s1267_s18, %s1034_s22 }
 0x193   : > { %v1440_v19 = vstv %s1292_s17  ;;  %s1654_s3 = spop %1653 }
 0x194   : > { %1442 = vst [vmem:[%s2701_s13] sm:$0x1] %v1440_v19  ;;  %s1347_s12 = sadd.f32 %s1654_s3, %s1176_s16  ;;  %s1656_s19 = spop %1655 }
 0x195   : > { %s1368_s21 = sadd.f32 %s1656_s19, %s1197_s20 }
 0x196   : > { %v1443_v30 = vstv %s1347_s12 }
 0x197   : > { %1445 = vst [vmem:[%s2701_s13 + $0x1] sm:$0x1] %v1443_v30  ;;  %v1449_v34 = vstv %s1368_s21  ;;  %s1658_s23 = spop %1657 }
 0x198   : > { %1451 = vst [vmem:[%s2701_s13 + $0x3] sm:$0x1] %v1449_v34  ;;  %s1660_s24 = spop %1659 }
 0x199   : > { %s1438_s25 = sadd.f32 %s1660_s24, %s1658_s23 }
 0x19b   : > { %s1439_s27 = sadd.f32 %s1438_s25, %s1268_s28 }
 0x19d   : > { %v1446_v22 = vstv %s1439_s27 }
 0x19e   : > { %1448 = vst [vmem:[%s2701_s13 + $0x2] sm:$0x1] %v1446_v22 }
 0x19f PF: > { %s2702_s26 = sld [smem:[#allocation2_spill]] }
 0x1a5   : > { %s13_s12 = sadd.s32 1, %s2702_s26  }
 0x1a6   : > { %p10_p5 = scmp.ge.s32.totalorder %s13_s12, 4  }
 0x1a8   :  { %12 = sbr.rel (!%p10_p5) target bundleno = 5 (0x5), region = 74 }

</bundles_post_ra>
